<compile_context>
chip_gen: v5e
topology: v5e:2x2
jax: 0.10.0
libtpu: 0.0.40
codegen_flags: <defaults>
</compile_context>

<pallas_src>
import functools

import jax
import jax.numpy as jnp
from jax import lax
from jax.experimental import pallas as pl
from jax.experimental.pallas import tpu as pltpu


def _scale_pred_kernel(x_ref, w1_ref, shift_ref, w2_ref, b2_ref, o_ref,
                       xp_s, *, H, W, Cin, Ch, nc5_pad):
    # x_ref     : (1, H, W, Cin)          bf16 input tile (one batch element)
    # w1_ref    : (9*Cin, Ch)             bf16 3x3 conv weights, tap-major, BN scale folded
    # shift_ref : (1, Ch)                 f32  folded BatchNorm shift
    # w2_ref    : (Ch, 3*nc5_pad)         bf16 1x1 conv weights, per-anchor lane-padded
    # b2_ref    : (1, 3*nc5_pad)          f32  1x1 conv bias, per-anchor lane-padded
    # o_ref     : (1, 3, H, W, nc5_pad)   bf16 anchor-major, lane-dense output
    # xp_s      : (H+2, W+2, Cin)         bf16 VMEM scratch (fused zero-padding)

    # Zero the halo ring once (batch axis is sequential/"arbitrary"); the
    # interior is fully rewritten every grid step, the border never is.
    @pl.when(pl.program_id(0) == 0)
    def _():
        xp_s[...] = jnp.zeros_like(xp_s)

    # Drop the unpadded tile into the interior of the padded scratch.
    xp_s[pl.ds(1, H), pl.ds(1, W), :] = x_ref[0]

    if Cin >= 128:
        # Large-channel path: 9 accumulated MXU matmuls straight from shifted
        # scratch views -- no 9x-duplicated im2col buffer in VMEM.  K=Cin>=128
        # already saturates the MXU contraction dim, so vmatmul count is the
        # same as the fat-K variant.
        acc = jnp.zeros((H * W, Ch), jnp.float32)
        for ky in range(3):
            for kx in range(3):
                tap = ky * 3 + kx
                patch = xp_s[ky:ky + H, kx:kx + W, :].reshape(H * W, Cin)
                acc = acc + jnp.dot(patch,
                                    w1_ref[tap * Cin:(tap + 1) * Cin, :],
                                    preferred_element_type=jnp.float32)
    else:
        # Small-channel path: one im2col patch and a single fat-K matmul.
        patches = [xp_s[ky:ky + H, kx:kx + W, :]
                   for ky in range(3) for kx in range(3)]
        col = jnp.concatenate(patches, axis=-1).reshape(H * W, 9 * Cin)
        acc = jnp.dot(col, w1_ref[...], preferred_element_type=jnp.float32)

    # Eval-mode BN: scale already folded into w1; apply shift, then LeakyReLU.
    h = acc + shift_ref[0]
    h = jnp.maximum(h, 0.1 * h)

    # 1x1 conv == channel matmul (per-anchor lane-padded N), plus bias.
    out = jnp.dot(h.astype(jnp.bfloat16), w2_ref[...],
                  preferred_element_type=jnp.float32) + b2_ref[0]
    out = out.astype(o_ref.dtype)

    # Anchor split is cheap 128-aligned lane slicing of the (H*W, 3*nc5_pad)
    # result; stores are lane-dense.
    for a in range(3):
        o_ref[0, a] = out[:, a * nc5_pad:(a + 1) * nc5_pad].reshape(H, W, nc5_pad)


def scale_prediction_pallas(x_nchw, params, num_classes):
    """Runs the ScalePrediction forward pass. x_nchw: (N, Cin, H, W) float32."""
    N, Cin, H, W = x_nchw.shape
    Ch = 2 * Cin
    nc5 = num_classes + 5
    nc5_pad = ((nc5 + 127) // 128) * 128     # per-anchor lane padding
    Cout_p = 3 * nc5_pad
    eps = 1e-5

    w1 = params["w1"]          # (3, 3, Cin, Ch)  HWIO
    gamma = params["gamma"]    # (Ch,)
    beta = params["beta"]      # (Ch,)
    rmean = params["rmean"]    # (Ch,)
    rvar = params["rvar"]      # (Ch,)
    w2 = params["w2"]          # (Ch, 3*nc5)
    b2 = params["b2"]          # (3*nc5,)

    # Fold BN (eval mode) into the conv weights; keep the shift as a bias.
    inv_std = 1.0 / jnp.sqrt(rvar + eps)
    bn_scale = gamma * inv_std                                   # (Ch,)
    bn_shift = (beta - rmean * bn_scale).reshape(1, Ch).astype(jnp.float32)
    w1_m = (w1 * bn_scale[None, None, None, :]).reshape(9 * Cin, Ch)
    w1_m = w1_m.astype(jnp.bfloat16)

    # Per-anchor lane-pad the 1x1 conv weights / bias (anchor-major layout).
    w2_a = params["w2"].reshape(Ch, 3, nc5)
    b2_a = params["b2"].reshape(3, nc5)
    w2_m = jnp.zeros((Ch, 3, nc5_pad), jnp.float32).at[:, :, :nc5].set(w2_a)
    w2_m = w2_m.reshape(Ch, Cout_p).astype(jnp.bfloat16)
    b2_m = jnp.zeros((3, nc5_pad), jnp.float32).at[:, :nc5].set(b2_a)
    b2_m = b2_m.reshape(1, Cout_p)

    # NCHW -> NHWC, bf16 (halves input HBM traffic). Zero-padding fused in-kernel.
    x_nhwc = jnp.transpose(x_nchw, (0, 2, 3, 1)).astype(jnp.bfloat16)

    # VMEM budget from actual buffer sizes (input/output double-buffered,
    # constants single-buffered, plus scratch and live intermediates).
    est = (2 * H * W * Cin * 2                       # input, 2 buffers, bf16
           + 2 * 3 * H * W * nc5_pad * 2             # output, 2 buffers, bf16
           + (9 * Cin * Ch + Ch * Cout_p) * 2        # weights, 1 buffer, bf16
           + (Ch + Cout_p) * 4                       # shift + bias, f32
           + (H + 2) * (W + 2) * Cin * 2             # padded scratch
           + H * W * Ch * 4                          # f32 hidden activation
           + H * W * Cout_p * 4)                     # f32 output accumulator
    if Cin < 128:
        est += H * W * 9 * Cin * 2                   # materialized im2col
    vmem_limit = int(min(max(2 * est, 32 * 1024 * 1024), 64 * 1024 * 1024))

    kernel = functools.partial(_scale_pred_kernel,
                               H=H, W=W, Cin=Cin, Ch=Ch, nc5_pad=nc5_pad)

    out5 = pl.pallas_call(
        kernel,
        out_shape=jax.ShapeDtypeStruct((N, 3, H, W, nc5_pad), jnp.bfloat16),
        grid_spec=pltpu.PrefetchScalarGridSpec(
            num_scalar_prefetch=0,
            grid=(N,),
            in_specs=[
                pl.BlockSpec((1, H, W, Cin), lambda b: (b, 0, 0, 0)),
                # Constants: same block every step -> single-buffered.
                pl.BlockSpec((9 * Cin, Ch), lambda b: (0, 0),
                             pipeline_mode=pl.Buffered(1)),
                pl.BlockSpec((1, Ch), lambda b: (0, 0),
                             pipeline_mode=pl.Buffered(1)),
                pl.BlockSpec((Ch, Cout_p), lambda b: (0, 0),
                             pipeline_mode=pl.Buffered(1)),
                pl.BlockSpec((1, Cout_p), lambda b: (0, 0),
                             pipeline_mode=pl.Buffered(1)),
            ],
            out_specs=pl.BlockSpec((1, 3, H, W, nc5_pad),
                                   lambda b: (b, 0, 0, 0, 0)),
            scratch_shapes=[pltpu.VMEM((H + 2, W + 2, Cin), jnp.bfloat16)],
        ),
        # "arbitrary": the batch loop must be sequential on one core so the
        # zero-once scratch halo init is valid on multi-TensorCore chips.
        compiler_params=pltpu.CompilerParams(
            dimension_semantics=("arbitrary",),
            vmem_limit_bytes=vmem_limit),
    )(x_nhwc, w1_m, bn_shift, w2_m, b2_m)

    # Output is already anchor-major (N, 3, H, W, nc5_pad): just drop the lane
    # padding (matches PyTorch reshape(N,3,nc+5,H,W).permute(0,1,3,4,2)).
    return out5[..., :nc5].astype(jnp.float32)


def _reference_forward(x_nchw, params, num_classes):
    """Pure-JAX reference (lax.conv, f32) for correctness checking."""
    N, Cin, H, W = x_nchw.shape
    eps = 1e-5
    x = jnp.transpose(x_nchw, (0, 2, 3, 1))  # NHWC
    y = lax.conv_general_dilated(
        x, params["w1"], window_strides=(1, 1), padding="SAME",
        dimension_numbers=("NHWC", "HWIO", "NHWC"))
    inv_std = 1.0 / jnp.sqrt(params["rvar"] + eps)
    y = (y - params["rmean"]) * inv_std * params["gamma"] + params["beta"]
    y = jnp.where(y > 0, y, 0.1 * y)
    y = jnp.einsum("nhwc,cd->nhwd", y, params["w2"]) + params["b2"]
    nc5 = num_classes + 5
    y = y.reshape(N, H, W, 3, nc5)
    return jnp.transpose(y, (0, 3, 1, 2, 4))


def make_params(key, in_channels, num_classes):
    Cin = in_channels
    Ch = 2 * Cin
    Cout = 3 * (num_classes + 5)
    k1, k2, k3, k4, k5, k6, k7 = jax.random.split(key, 7)
    return {
        "w1": 0.1 * jax.random.normal(k1, (3, 3, Cin, Ch), jnp.float32),
        "gamma": 1.0 + 0.1 * jax.random.normal(k2, (Ch,), jnp.float32),
        "beta": 0.1 * jax.random.normal(k3, (Ch,), jnp.float32),
        "rmean": 0.05 * jax.random.normal(k4, (Ch,), jnp.float32),
        "rvar": jnp.abs(1.0 + 0.1 * jax.random.normal(k5, (Ch,), jnp.float32)),
        "w2": 0.1 * jax.random.normal(k6, (Ch, Cout), jnp.float32),
        "b2": 0.01 * jax.random.normal(k7, (Cout,), jnp.float32),
    }


if __name__ == "__main__":
    N, Cin, H, W = 2, 8, 8, 8
    num_classes = 3

    key = jax.random.PRNGKey(0)
    kx, kp = jax.random.split(key)
    x = jax.random.normal(kx, (N, Cin, H, W), jnp.float32)
    params = make_params(kp, Cin, num_classes)

    out = scale_prediction_pallas(x, params, num_classes)
    out = jax.block_until_ready(out)

    ref = _reference_forward(x, params, num_classes)
    assert out.shape == (N, 3, H, W, num_classes + 5), out.shape
    # bf16 matmul operands + bf16 output store with f32 accumulation.
    assert jnp.allclose(out, ref, atol=4e-2, rtol=4e-2), "mismatch vs reference"

    print("KERNEL_OK")
</pallas_src>

<mosaic_0001>
module attributes {stable_mosaic.version = 11 : i64} {
  func.func @_scale_pred_kernel(%arg0: i32, %arg1: memref<1x8x8x8xbf16, #tpu.memory_space<vmem>>, %arg2: memref<72x16xbf16, #tpu.memory_space<vmem>>, %arg3: memref<1x16xf32, #tpu.memory_space<vmem>>, %arg4: memref<16x384xbf16, #tpu.memory_space<vmem>>, %arg5: memref<1x384xf32, #tpu.memory_space<vmem>>, %arg6: memref<1x3x8x8x128xbf16, #tpu.memory_space<vmem>>, %arg7: memref<10x10x8xbf16, #tpu.memory_space<vmem>>) attributes {dimension_semantics = [#tpu.dimension_semantics<arbitrary>], iteration_bounds = array<i64: 2>, scalar_prefetch = 0 : i64, scratch_operands = 1 : i64, tpu.core_type = #tpu.core_type<tc>, window_params = [{transform_indices = @transform_0, window_bounds = array<i64: 1, 8, 8, 8>}, {pipeline_mode = #tpu.pipeline_mode<synchronous>, transform_indices = @transform_1, window_bounds = array<i64: 72, 16>}, {pipeline_mode = #tpu.pipeline_mode<synchronous>, transform_indices = @transform_2, window_bounds = array<i64: 1, 16>}, {pipeline_mode = #tpu.pipeline_mode<synchronous>, transform_indices = @transform_3, window_bounds = array<i64: 16, 384>}, {pipeline_mode = #tpu.pipeline_mode<synchronous>, transform_indices = @transform_4, window_bounds = array<i64: 1, 384>}, {transform_indices = @transform_5, window_bounds = array<i64: 1, 3, 8, 8, 128>}]} {
    %c0_i32 = arith.constant 0 : i32
    %0 = arith.cmpi eq, %arg0, %c0_i32 : i32
    %1 = arith.extui %0 : i1 to i32
    %c0_i32_0 = arith.constant 0 : i32
    %2 = arith.cmpi ne, %1, %c0_i32_0 : i32
    scf.if %2 {
      %cst_57 = arith.constant 0.000000e+00 : bf16
      %51 = vector.broadcast %cst_57 : bf16 to vector<10x10x8xbf16>
      %c0_58 = arith.constant 0 : index
      %c0_59 = arith.constant 0 : index
      %c0_60 = arith.constant 0 : index
      %52 = vector.load %arg7[%c0_58, %c0_59, %c0_60] : memref<10x10x8xbf16, #tpu.memory_space<vmem>>, vector<10x10x8xbf16>
      tpu.vector_store %arg7[%c0_58, %c0_59, %c0_60], %51 {strides = array<i32>} : memref<10x10x8xbf16, #tpu.memory_space<vmem>>, vector<10x10x8xbf16>,
    } else {
    }
    %c0 = arith.constant 0 : index
    %c0_1 = arith.constant 0 : index
    %c0_2 = arith.constant 0 : index
    %c0_3 = arith.constant 0 : index
    %3 = vector.load %arg1[%c0, %c0_1, %c0_2, %c0_3] : memref<1x8x8x8xbf16, #tpu.memory_space<vmem>>, vector<1x8x8x8xbf16>
    %4 = vector.shape_cast %3 : vector<1x8x8x8xbf16> to vector<8x8x8xbf16>
    %c1 = arith.constant 1 : index
    %c1_4 = arith.constant 1 : index
    %c0_5 = arith.constant 0 : index
    %5 = vector.load %arg7[%c1, %c1_4, %c0_5] : memref<10x10x8xbf16, #tpu.memory_space<vmem>>, vector<8x8x8xbf16>
    tpu.vector_store %arg7[%c1, %c1_4, %c0_5], %4 {strides = array<i32>} : memref<10x10x8xbf16, #tpu.memory_space<vmem>>, vector<8x8x8xbf16>,
    %c0_6 = arith.constant 0 : index
    %c0_7 = arith.constant 0 : index
    %c0_8 = arith.constant 0 : index
    %6 = vector.load %arg7[%c0_6, %c0_7, %c0_8] : memref<10x10x8xbf16, #tpu.memory_space<vmem>>, vector<8x8x8xbf16>
    %c0_9 = arith.constant 0 : index
    %c1_10 = arith.constant 1 : index
    %c0_11 = arith.constant 0 : index
    %7 = vector.load %arg7[%c0_9, %c1_10, %c0_11] : memref<10x10x8xbf16, #tpu.memory_space<vmem>>, vector<8x8x8xbf16>
    %c0_12 = arith.constant 0 : index
    %c2 = arith.constant 2 : index
    %c0_13 = arith.constant 0 : index
    %8 = vector.load %arg7[%c0_12, %c2, %c0_13] : memref<10x10x8xbf16, #tpu.memory_space<vmem>>, vector<8x8x8xbf16>
    %c1_14 = arith.constant 1 : index
    %c0_15 = arith.constant 0 : index
    %c0_16 = arith.constant 0 : index
    %9 = vector.load %arg7[%c1_14, %c0_15, %c0_16] : memref<10x10x8xbf16, #tpu.memory_space<vmem>>, vector<8x8x8xbf16>
    %c1_17 = arith.constant 1 : index
    %c1_18 = arith.constant 1 : index
    %c0_19 = arith.constant 0 : index
    %10 = vector.load %arg7[%c1_17, %c1_18, %c0_19] : memref<10x10x8xbf16, #tpu.memory_space<vmem>>, vector<8x8x8xbf16>
    %c1_20 = arith.constant 1 : index
    %c2_21 = arith.constant 2 : index
    %c0_22 = arith.constant 0 : index
    %11 = vector.load %arg7[%c1_20, %c2_21, %c0_22] : memref<10x10x8xbf16, #tpu.memory_space<vmem>>, vector<8x8x8xbf16>
    %c2_23 = arith.constant 2 : index
    %c0_24 = arith.constant 0 : index
    %c0_25 = arith.constant 0 : index
    %12 = vector.load %arg7[%c2_23, %c0_24, %c0_25] : memref<10x10x8xbf16, #tpu.memory_space<vmem>>, vector<8x8x8xbf16>
    %c2_26 = arith.constant 2 : index
    %c1_27 = arith.constant 1 : index
    %c0_28 = arith.constant 0 : index
    %13 = vector.load %arg7[%c2_26, %c1_27, %c0_28] : memref<10x10x8xbf16, #tpu.memory_space<vmem>>, vector<8x8x8xbf16>
    %c2_29 = arith.constant 2 : index
    %c2_30 = arith.constant 2 : index
    %c0_31 = arith.constant 0 : index
    %14 = vector.load %arg7[%c2_29, %c2_30, %c0_31] : memref<10x10x8xbf16, #tpu.memory_space<vmem>>, vector<8x8x8xbf16>
    %15 = tpu.concatenate %6, %7, %8, %9, %10, %11, %12, %13, %14 in 2 : vector<8x8x8xbf16>, vector<8x8x8xbf16>, vector<8x8x8xbf16>, vector<8x8x8xbf16>, vector<8x8x8xbf16>, vector<8x8x8xbf16>, vector<8x8x8xbf16>, vector<8x8x8xbf16>, vector<8x8x8xbf16> -> vector<8x8x72xbf16>
    %16 = vector.shape_cast %15 : vector<8x8x72xbf16> to vector<64x72xbf16>
    %c0_32 = arith.constant 0 : index
    %c0_33 = arith.constant 0 : index
    %17 = vector.load %arg2[%c0_32, %c0_33] : memref<72x16xbf16, #tpu.memory_space<vmem>>, vector<72x16xbf16>
    %cst = arith.constant dense<0.000000e+00> : vector<64x16xf32>
    %18 = tpu.matmul %16, %17, %cst {dimension_numbers = #tpu.dot_dimension_numbers<[1], [0], [0], [1], [0, 0, 1, 1], [], []>} : vector<64x72xbf16>, vector<72x16xbf16>, vector<64x16xf32> -> vector<64x16xf32>
    %c0_34 = arith.constant 0 : index
    %c0_35 = arith.constant 0 : index
    %19 = vector.load %arg3[%c0_34, %c0_35] : memref<1x16xf32, #tpu.memory_space<vmem>>, vector<1x16xf32>
    %20 = vector.shape_cast %19 : vector<1x16xf32> to vector<16xf32>
    %21 = vector.shape_cast %20 : vector<16xf32> to vector<1x16xf32>
    %22 = vector.broadcast %21 : vector<1x16xf32> to vector<64x16xf32>
    %23 = arith.addf %18, %22 : vector<64x16xf32>
    %cst_36 = arith.constant 1.000000e-01 : f32
    %24 = vector.broadcast %cst_36 : f32 to vector<64x16xf32>
    %25 = arith.mulf %24, %23 : vector<64x16xf32>
    %26 = arith.maximumf %23, %25 : vector<64x16xf32>
    %27 = arith.truncf %26 : vector<64x16xf32> to vector<64x16xbf16>
    %c0_37 = arith.constant 0 : index
    %c0_38 = arith.constant 0 : index
    %28 = vector.load %arg4[%c0_37, %c0_38] : memref<16x384xbf16, #tpu.memory_space<vmem>>, vector<16x384xbf16>
    %cst_39 = arith.constant dense<0.000000e+00> : vector<64x384xf32>
    %29 = tpu.matmul %27, %28, %cst_39 {dimension_numbers = #tpu.dot_dimension_numbers<[1], [0], [0], [1], [0, 0, 1, 1], [], []>} : vector<64x16xbf16>, vector<16x384xbf16>, vector<64x384xf32> -> vector<64x384xf32>
    %c0_40 = arith.constant 0 : index
    %c0_41 = arith.constant 0 : index
    %30 = vector.load %arg5[%c0_40, %c0_41] : memref<1x384xf32, #tpu.memory_space<vmem>>, vector<1x384xf32>
    %31 = vector.shape_cast %30 : vector<1x384xf32> to vector<384xf32>
    %32 = vector.shape_cast %31 : vector<384xf32> to vector<1x384xf32>
    %33 = vector.broadcast %32 : vector<1x384xf32> to vector<64x384xf32>
    %34 = arith.addf %29, %33 : vector<64x384xf32>
    %35 = arith.truncf %34 : vector<64x384xf32> to vector<64x384xbf16>
    %36 = vector.extract_strided_slice %35 {offsets = [0, 0], sizes = [64, 128], strides = [1, 1]} : vector<64x384xbf16> to vector<64x128xbf16>
    %37 = vector.shape_cast %36 : vector<64x128xbf16> to vector<8x8x128xbf16>
    %c0_42 = arith.constant 0 : index
    %c0_43 = arith.constant 0 : index
    %c0_44 = arith.constant 0 : index
    %c0_45 = arith.constant 0 : index
    %c0_46 = arith.constant 0 : index
    %38 = vector.load %arg6[%c0_42, %c0_43, %c0_44, %c0_45, %c0_46] : memref<1x3x8x8x128xbf16, #tpu.memory_space<vmem>>, vector<1x1x8x8x128xbf16>
    %39 = vector.shape_cast %38 : vector<1x1x8x8x128xbf16> to vector<8x8x128xbf16>
    %40 = vector.shape_cast %37 : vector<8x8x128xbf16> to vector<1x1x8x8x128xbf16>
    tpu.vector_store %arg6[%c0_42, %c0_43, %c0_44, %c0_45, %c0_46], %40 {strides = array<i32>} : memref<1x3x8x8x128xbf16, #tpu.memory_space<vmem>>, vector<1x1x8x8x128xbf16>,
    %41 = vector.extract_strided_slice %35 {offsets = [0, 128], sizes = [64, 128], strides = [1, 1]} : vector<64x384xbf16> to vector<64x128xbf16>
    %42 = vector.shape_cast %41 : vector<64x128xbf16> to vector<8x8x128xbf16>
    %c0_47 = arith.constant 0 : index
    %c1_48 = arith.constant 1 : index
    %c0_49 = arith.constant 0 : index
    %c0_50 = arith.constant 0 : index
    %c0_51 = arith.constant 0 : index
    %43 = vector.load %arg6[%c0_47, %c1_48, %c0_49, %c0_50, %c0_51] : memref<1x3x8x8x128xbf16, #tpu.memory_space<vmem>>, vector<1x1x8x8x128xbf16>
    %44 = vector.shape_cast %43 : vector<1x1x8x8x128xbf16> to vector<8x8x128xbf16>
    %45 = vector.shape_cast %42 : vector<8x8x128xbf16> to vector<1x1x8x8x128xbf16>
    tpu.vector_store %arg6[%c0_47, %c1_48, %c0_49, %c0_50, %c0_51], %45 {strides = array<i32>} : memref<1x3x8x8x128xbf16, #tpu.memory_space<vmem>>, vector<1x1x8x8x128xbf16>,
    %46 = vector.extract_strided_slice %35 {offsets = [0, 256], sizes = [64, 128], strides = [1, 1]} : vector<64x384xbf16> to vector<64x128xbf16>
    %47 = vector.shape_cast %46 : vector<64x128xbf16> to vector<8x8x128xbf16>
    %c0_52 = arith.constant 0 : index
    %c2_53 = arith.constant 2 : index
    %c0_54 = arith.constant 0 : index
    %c0_55 = arith.constant 0 : index
    %c0_56 = arith.constant 0 : index
    %48 = vector.load %arg6[%c0_52, %c2_53, %c0_54, %c0_55, %c0_56] : memref<1x3x8x8x128xbf16, #tpu.memory_space<vmem>>, vector<1x1x8x8x128xbf16>
    %49 = vector.shape_cast %48 : vector<1x1x8x8x128xbf16> to vector<8x8x128xbf16>
    %50 = vector.shape_cast %47 : vector<8x8x128xbf16> to vector<1x1x8x8x128xbf16>
    tpu.vector_store %arg6[%c0_52, %c2_53, %c0_54, %c0_55, %c0_56], %50 {strides = array<i32>} : memref<1x3x8x8x128xbf16, #tpu.memory_space<vmem>>, vector<1x1x8x8x128xbf16>,
    return
  }
  func.func @transform_0(%arg0: i32) -> (i32, i32, i32, i32) {
    %c0_i32 = arith.constant 0 : i32
    %c0_i32_0 = arith.constant 0 : i32
    %c0_i32_1 = arith.constant 0 : i32
    %c0_i32_2 = arith.constant 0 : i32
    return %arg0, %c0_i32, %c0_i32_0, %c0_i32_1 : i32, i32, i32, i32
  }
  func.func @transform_1(%arg0: i32) -> (i32, i32) {
    %c0_i32 = arith.constant 0 : i32
    %c0_i32_0 = arith.constant 0 : i32
    %c0_i32_1 = arith.constant 0 : i32
    return %c0_i32, %c0_i32_0 : i32, i32
  }
  func.func @transform_2(%arg0: i32) -> (i32, i32) {
    %c0_i32 = arith.constant 0 : i32
    %c0_i32_0 = arith.constant 0 : i32
    %c0_i32_1 = arith.constant 0 : i32
    return %c0_i32, %c0_i32_0 : i32, i32
  }
  func.func @transform_3(%arg0: i32) -> (i32, i32) {
    %c0_i32 = arith.constant 0 : i32
    %c0_i32_0 = arith.constant 0 : i32
    %c0_i32_1 = arith.constant 0 : i32
    return %c0_i32, %c0_i32_0 : i32, i32
  }
  func.func @transform_4(%arg0: i32) -> (i32, i32) {
    %c0_i32 = arith.constant 0 : i32
    %c0_i32_0 = arith.constant 0 : i32
    %c0_i32_1 = arith.constant 0 : i32
    return %c0_i32, %c0_i32_0 : i32, i32
  }
  func.func @transform_5(%arg0: i32) -> (i32, i32, i32, i32, i32) {
    %c0_i32 = arith.constant 0 : i32
    %c0_i32_0 = arith.constant 0 : i32
    %c0_i32_1 = arith.constant 0 : i32
    %c0_i32_2 = arith.constant 0 : i32
    %c0_i32_3 = arith.constant 0 : i32
    return %arg0, %c0_i32, %c0_i32_0, %c0_i32_1, %c0_i32_2 : i32, i32, i32, i32, i32
  }
}

</mosaic_0001>

<bundles_post_ra>
// kernel: tpu_custom_call.1
= control target key start
LH: loop header
LB: loop body
LE: loop exit
PB: predicated region body
PF: predicated region fallthrough
CT: control target
= control target key end

     0   :  { %10 = vsyncpa [#allocation4], 0  ;;  %s2489_s0 = inlined_call_operand.hbm [shape: bf16[2,8,8,8], index: 0, kind: input, shape index: {}]   ;;  %s2490_s1 = inlined_call_operand.vmem [shape: bf16[72,16], index: 1, kind: input, shape index: {}]   ;;  %s2491_s2 = inlined_call_operand.vmem [shape: f32[1,16], index: 2, kind: input, shape index: {}]   ;;  %s2492_s3 = inlined_call_operand.vmem [shape: bf16[16,384], index: 3, kind: input, shape index: {}]   ;;  %s2493_s4 = inlined_call_operand.vmem [shape: f32[1,384], index: 4, kind: input, shape index: {}]   ;;  %s2494_s5 = inlined_call_operand.hbm [shape: bf16[2,3,8,8,128], index: 5, kind: output, shape index: {}]  }
   0x1   :  { %12 = vsyncpa [#allocation4 + $0x1], 0 }
   0x2   :  { %13 = vsyncpa [#allocation5], 0 }
   0x3   :  { %15 = vsyncpa [#allocation5 + $0x1], 0  ;;  %s1896_s18 = smov 0   ;;  %s1898_s19 = smov 0  }
   0x4   :  { %s1900_s20 = smov 0   ;;  %s1902_s21 = smov 0  }
   0x5 LB: > { %s1917_s22 = sadd.s32 4294967295, %s1852_s21   ;;  %s1568_s23 = sadd.s32 4294967294, %s1852_s21   ;;  %s1852_s21 = sphi %s1902_s21, %s2508_s21   ;;  %s1848_s20 = sphi %s1900_s20, %s2507_s20   ;;  %s1844_s19 = sphi %s1898_s19, %s2506_s19   ;;  %s1840_s18 = sphi %s1896_s18, %s2505_s18  }
   0x6   : > { %s1921_s24 = sadd.s32 1, %s1852_s21   ;;  %s28_s25 = sadd.s32 1, %s1848_s20 }
   0x7   : > { %s25_s26 = ssub.s32 %s1852_s21, %s1921_s24  ;;  %p35_p0 = scmp.ne.s32.totalorder %s1848_s20, %s1844_s19 }
   0x8   : > { %p26_p1 = scmp.eq.s32.totalorder %s25_s26, 0  ;;  %p36_p2 = scmp.eq.s32.totalorder %s1852_s21, 0 }
   0x9   : > { %p41_p3 = scmp.ne.s32.totalorder %s1844_s19, %s1840_s18  ;;  %p42_p4 = scmp.eq.s32.totalorder %s1917_s22, 0 }
   0xa   : > { %s1933_s27 = scalar_select %p26_p1, %s1848_s20, %s28_s25  }
   0xb   : > { %p1935_p5 = por %p36_p2, %p35_p0  ;;  %p1939_p6 = por %p42_p4, %p41_p3 }
   0xc   : > { %p149_p7 = scmp.eq.s32.totalorder %s1917_s22, 1  ;;  %p155_p8 = scmp.eq.s32.totalorder %s1568_s23, 1 }
   0xd   : > { %p1709_p10 = scmp.lt.s32.totalorder %s1852_s21, 2  ;;  %s187_s7 = sand.u32 1, %s1848_s20  }
   0xe   : > { %p1946_p11 = por %p149_p7, %p35_p0  ;;  %p1950_p12 = por %p155_p8, %p41_p3 }
   0xf   : > { %s1640_s8 = sshll.u32 %s1852_s21, 5  ;;  %s1571_s9 = sshll.u32 %s187_s7, 5 }
  0x10   : > { %s196_s12 = scalar_lea.hbm %s2489_s0, %s1640_s8  ;;  %s191_s14 = scalar_lea.vmem [#allocation3], %s1571_s9 }
  0x11   : > { %s197_s13 = sshll.u32 %s196_s12, 4  ;;  %s199_s15 = sshll.u32 %s191_s14, 4  ;;  %s198_s13 = int_to_ptr.hbm [resolvable:$true] %s197_s13  ;;  %s200_s15 = int_to_ptr.vmem [resolvable:$true] %s199_s15 }
  0x12   : > { %p1961_p13 = pnand %p1709_p10, %p1935_p5  ;;  %p1574_p0 = scmp.ge.s32.totalorder %s1852_s21, 1 }
  0x13   : > { %p207_p1 = scmp.lt.s32.totalorder %s1852_s21, 3  ;;  %s188_s17 = scalar_lea.sflag [#allocation4], %s187_s7 }
  0x14   : > { %s1756_s23 = sshra.s32 %s198_s13, 4  ;;  %p1760_p3 = pneg %p1961_p13  ;;  %s1757_s23 = int_to_ptr.hbm [resolvable:$true] %s1756_s23 }
  0x15   : > { %s1758_s25 = scalar_lea.hbm %s1757_s23, 32  ;;  %s1763_s28 = scalar_lea.hbm %s2489_s0, 64 }
  0x16   : > { %p1759_p2 = scmp.ne.s32.totalorder %s1757_s23, %s1758_s25  ;;  %p1764_p5 = scmp.lt.s32.totalorder %s1757_s23, %s2489_s0 }
  0x17   : > { %p1765_p8 = scmp.lt.s32.totalorder %s1763_s28, %s1758_s25 }
  0x18   : > { %p1761_p4 = pnand %p1760_p3, %p1759_p2 }
  0x19   : > { %p1766_p10 = por %p1765_p8, %p1764_p5 }
  0x1a   : > { %p1762_p7 = pneg %p1761_p4 }
  0x1c   : > { %p1767_p9 = pnand %p1766_p10, %p1762_p7 }
  0x1e   : > { %1770 = shalt.err (!%p1767_p9)
}
  0x1f   : > { %s1854_s7 = smov 64   ;;  %s1855_s11 = smov 4  }
  0x20   : > { %1704 = dma.hbm_to_vmem [thread:$0]  (!%p1961_p13), %s198_s13, 512, %s200_s15, %s188_s17, %s1854_s7, %s1854_s7, %s1855_s11  }
  0x21   : > { %p208_p2 = pnand %p1574_p0, %p207_p1 }
  0x22   : > { %s1982_s12 = sand.u32 (!%p208_p2), 1, %s1844_s19  }
  0x23   : > { %211 = sbr.rel (%p208_p2) target bundleno = 664 (0x298), region = 40  ;;  %s1575_s14 = sshll.u32 (!%p208_p2), %s1982_s12, 5 }
  0x24   : > { %s214_s23 = scalar_lea.sflag (!%p208_p2), [#allocation4], %s1982_s12  ;;  %s1986_s25 = scalar_lea.vmem (!%p208_p2), [#allocation3], %s1575_s14 }
  0x28   : > { %1831 = dma.done.wait (%p1939_p6), %s214_s23, 512  }
  0x29   : > { %1833 = vsyncadd (%p1939_p6), %s214_s23, 4294966784  ;;  %s1695_s13 = smul.u32 96, %s1982_s12  ;;  %p1576_p9 = scmp.ne.s32.totalorder %s1917_s22, 0 }
  0x2b   : > { %s1993_s15 = scalar_lea.vmem [#allocation6], %s1695_s13  ;;  %249 = sbr.rel (%p1576_p9) target bundleno = 69 (0x45), region = 48 }
  0x30   : > { %vm250_vm0 = vcmask 60416   ;;  %v1856_v0 = vmov 0   ;;  %vm252_vm1 = vcmask 57344  }
  0x31   : > { %251 = vst.msk [vmem:[#allocation2] sm:$0xf] %vm250_vm0, %v1856_v0 }
  0x32   : > { %254 = vst.msk [vmem:[#allocation2 + $0x8] sm:$0xf] %vm250_vm0, %v1856_v0 }
  0x33   : > { %256 = vst.msk [vmem:[#allocation2 + $0x10] sm:$0xf] %vm250_vm0, %v1856_v0 }
  0x34   : > { %258 = vst.msk [vmem:[#allocation2 + $0x18] sm:$0xf] %vm250_vm0, %v1856_v0 }
  0x35   : > { %260 = vst.msk [vmem:[#allocation2 + $0x20] sm:$0xf] %vm250_vm0, %v1856_v0 }
  0x36   : > { %262 = vst.msk [vmem:[#allocation2 + $0x28] sm:$0xf] %vm250_vm0, %v1856_v0 }
  0x37   : > { %264 = vst.msk [vmem:[#allocation2 + $0x30] sm:$0xf] %vm250_vm0, %v1856_v0 }
  0x38   : > { %266 = vst.msk [vmem:[#allocation2 + $0x38] sm:$0xf] %vm250_vm0, %v1856_v0 }
  0x39   : > { %268 = vst.msk [vmem:[#allocation2 + $0x40] sm:$0xf] %vm250_vm0, %v1856_v0 }
  0x3a   : > { %270 = vst.msk [vmem:[#allocation2 + $0x48] sm:$0xf] %vm250_vm0, %v1856_v0 }
  0x3b   : > { %253 = vst.msk [vmem:[#allocation2 + $0x4] sm:$0x1] %vm252_vm1, %v1856_v0 }
  0x3c   : > { %255 = vst.msk [vmem:[#allocation2 + $0xc] sm:$0x1] %vm252_vm1, %v1856_v0 }
  0x3d   : > { %257 = vst.msk [vmem:[#allocation2 + $0x14] sm:$0x1] %vm252_vm1, %v1856_v0 }
  0x3e   : > { %259 = vst.msk [vmem:[#allocation2 + $0x1c] sm:$0x1] %vm252_vm1, %v1856_v0 }
  0x3f   : > { %261 = vst.msk [vmem:[#allocation2 + $0x24] sm:$0x1] %vm252_vm1, %v1856_v0 }
  0x40   : > { %263 = vst.msk [vmem:[#allocation2 + $0x2c] sm:$0x1] %vm252_vm1, %v1856_v0 }
  0x41   : > { %265 = vst.msk [vmem:[#allocation2 + $0x34] sm:$0x1] %vm252_vm1, %v1856_v0 }
  0x42   : > { %267 = vst.msk [vmem:[#allocation2 + $0x3c] sm:$0x1] %vm252_vm1, %v1856_v0 }
  0x43   : > { %269 = vst.msk [vmem:[#allocation2 + $0x44] sm:$0x1] %vm252_vm1, %v1856_v0 }
  0x44   : > { %271 = vst.msk [vmem:[#allocation2 + $0x4c] sm:$0x1] %vm252_vm1, %v1856_v0 }
  0x45 PF: > { %v423_v1 = vld [vmem:[#allocation2 + $0x4] sm:$0x1]  ;;  %v431_v2 = vld [vmem:[#allocation2] sm:$0xe]  ;;  %v273_v6 = vld [vmem:[%s1986_s25 + $0x4] sm:$0xf] }
  0x46   : > { %v505_v3 = vunpack.c.l.b16 %v423_v1  ;;  %v608_v4 = vunpack.c.l.b16 %v431_v2  ;;  %v1996_v5 = vld [vmem:[#allocation2] sm:$0xf]  ;;  %vm361_vm2 = vcmask 60416   ;;  %v289_v8 = vshrl.u32 %v273_v6, 16  ;;  %v373_v14 = vld [vmem:[#allocation2 + $0x10] sm:$0xf] }
  0x47   : > { %v504_v7 = vunpack.c.l.b16 %v1996_v5  ;;  %v292_v9 = vshll.u32 %v273_v6, 16  ;;  %vm362_vm3 = vsmask.f32 7938  ;;  %vm367_vm4 = vcmask 57344   ;;  %v272_v15 = vld [vmem:[%s1986_s25] sm:$0xf] }
  0x48   : > { %v616_v10 = vpack.c.b16 %v505_v3, %v608_v4  ;;  %vm368_vm5 = vsmask.f32 256  ;;  %v291_v12 = vrot.slane %v289_v8, 7  ;;  %vm2000_vm6 = vmand %vm361_vm2, %vm362_vm3  ;;  %v376_v18 = vld [vmem:[#allocation2 + $0x14] sm:$0x1]  ;;  %v281_v19 = vshrl.u32 %v272_v15, 16 }
  0x49   : > { %v520_v11 = vpack.c.b16 %v505_v3, %v504_v7  ;;  %vm2005_vm7 = vmand %vm367_vm4, %vm368_vm5  ;;  %v284_v20 = vshll.u32 %v272_v15, 16  ;;  %v274_v25 = vld [vmem:[%s1986_s25 + $0x8] sm:$0xf]  ;;  %s1857_s29 = smov 16   ;;  %v364_v27 = vld [vmem:[#allocation2 + $0x8] sm:$0xf] }
  0x4a   : > { %v624_v16 = vrot.slane %v616_v10, 1  ;;  %v294_v23 = vor.u32 %v292_v9, %v291_v12  ;;  %v295_v24 = vrot.slane %v291_v12, 4  ;;  %v283_v26 = vrot.slane %v281_v19, 7  ;;  %v370_v33 = vld [vmem:[#allocation2 + $0xc] sm:$0x1]  ;;  %s1858_s16 = smov 8  }
  0x4b   : > { %v529_v21 = vshrl.u32 %v520_v11, 16  ;;  %v531_v22 = vshll.u32 %v520_v11, 16  ;;  %v297_v28 = vshrl.u32 %v274_v25, 16  ;;  %v300_v29 = vshll.u32 %v274_v25, 16  ;;  %v379_v38 = vld [vmem:[#allocation2 + $0x18] sm:$0xf] }
  0x4c   : > { %632 = vrot.lane.b32.xlu1 %v624_v16, %s1857_s29  ;;  %v374_v31 = vsel %vm2000_vm6, %v294_v23, %v373_v14  ;;  %v377_v32 = vsel %vm2005_vm7, %v295_v24, %v376_v18  ;;  %v286_v34 = vor.u32 %v284_v20, %v283_v26  ;;  %v287_v35 = vrot.slane %v283_v26, 4  ;;  %v382_v39 = vld [vmem:[#allocation2 + $0x1c] sm:$0x1]  ;;  %s1859_s17 = smov 48   ;;  %s1860_s26 = smov 40  }
  0x4d   : > { %v533_v30 = vrot.slane %v531_v22, 1  ;;  %375 = vst [vmem:[#allocation2 + $0x10] sm:$0xf] %v374_v31  ;;  %v299_v36 = vrot.slane %v297_v28, 7  ;;  %s1861_s8 = smov 24   ;;  %s1862_s28 = smov 32  }
  0x4e   : > { %378 = vst [vmem:[#allocation2 + $0x14] sm:$0x1] %v377_v32  ;;  %v365_v40 = vsel %vm2000_vm6, %v286_v34, %v364_v27  ;;  %v371_v41 = vsel %vm2005_vm7, %v287_v35, %v370_v33  ;;  %v275_v32 = vld [vmem:[%s1986_s25 + $0xc] sm:$0xf]  ;;  %s1863_s9 = smov 56   ;;  %s1864_s10 = smov 64  }
  0x4f   : > { %v534_v37 = vor.u32 %v533_v30, %v529_v21  ;;  %v302_v42 = vor.u32 %v300_v29, %v299_v36  ;;  %v303_v43 = vrot.slane %v299_v36, 4  ;;  %366 = vst [vmem:[#allocation2 + $0x8] sm:$0xf] %v365_v40  ;;  %vm1233_vm8 = vcmask 1043456   ;;  %s1480_s13 = scalar_lea.sflag [#allocation5], %s1982_s12 }
  0x50   : > { %372 = vst [vmem:[#allocation2 + $0xc] sm:$0x1] %v371_v41  ;;  %v305_v41 = vshrl.u32 %v275_v32, 16  ;;  %vm1016_vm9 = vcmask 64512   ;;  %vm1041_vm10 = vcmask 130048   ;;  %vm1058_vm11 = vcmask 195584  }
  0x51   : > { %584 = vrot.lane.b32.xlu0 %v534_v37, %s1858_s16  ;;  %v380_v44 = vsel %vm2000_vm6, %v302_v42, %v379_v38  ;;  %v383_v45 = vsel %vm2005_vm7, %v303_v43, %v382_v39  ;;  %v308_v42 = vshll.u32 %v275_v32, 16  ;;  %vm1075_vm12 = vcmask 261120  }
  0x52   : > { %381 = vst [vmem:[#allocation2 + $0x18] sm:$0xf] %v380_v44  ;;  %v307_v44 = vrot.slane %v305_v41, 7  ;;  %vm1092_vm13 = vcmask 326656   ;;  %vm1109_vm14 = vcmask 392192   ;;  %vm1126_vm15 = vcmask 457728  }
  0x53   : > { %384 = vst [vmem:[#allocation2 + $0x1c] sm:$0x1] %v383_v45  ;;  %vm1143_vm0 = vcmask 523264   ;;  %vm1220_vm1 = vcmask 588800  }
  0x54   : > { %v464_v46 = vld [vmem:[#allocation2 + $0x10] sm:$0xf] }
  0x55   : > { %v456_v47 = vld [vmem:[#allocation2 + $0x10] sm:$0xe]  ;;  %v840_v49 = vunpack.c.l.b16 %v464_v46  ;;  %v448_v50 = vld [vmem:[#allocation2 + $0x14] sm:$0x1] }
  0x56   : > { %v440_v48 = vld [vmem:[#allocation2 + $0x10] sm:$0xf]  ;;  %v793_v51 = vunpack.c.l.b16 %v456_v47  ;;  %v697_v53 = vunpack.c.l.b16 %v448_v50  ;;  %v432_v55 = vld [vmem:[#allocation2 + $0x8] sm:$0xe]  ;;  %v2033_v14 = vld [vmem:[#allocation2 + $0x14] sm:$0x1] }
  0x57   : > { %v657_v52 = vunpack.c.l.b16 %v440_v48  ;;  %v848_v54 = vpack.c.b16 %v840_v49, %v840_v49  ;;  %v2024_v56 = vld [vmem:[#allocation2 + $0x8] sm:$0xf]  ;;  %v424_v59 = vld [vmem:[#allocation2 + $0xc] sm:$0x1]  ;;  %v609_v60 = vunpack.c.l.b16 %v432_v55  ;;  %v880_v22 = vunpack.c.l.b16 %v2033_v14  ;;  %v2042_v29 = vld [vmem:[#allocation2 + $0x10] sm:$0xf] }
  0x58   : > { %v439_v57 = vld [vmem:[#allocation2 + $0x8] sm:$0xf]  ;;  %v801_v58 = vpack.c.b16 %v697_v53, %v793_v51  ;;  %v506_v61 = vunpack.c.l.b16 %v2024_v56  ;;  %v447_v63 = vld [vmem:[#allocation2 + $0xc] sm:$0x1]  ;;  %v507_v0 = vunpack.c.l.b16 %v424_v59  ;;  %v2044_v30 = vld [vmem:[#allocation2 + $0x14] sm:$0x1]  ;;  %v508_v36 = vunpack.c.l.b16 %v2042_v29 }
  0x59   : > { %v705_v62 = vpack.c.b16 %v697_v53, %v657_v52  ;;  %856 = vrot.lane.b32.xlu1 %v848_v54, %s1859_s17  ;;  %v656_v1 = vunpack.c.l.b16 %v439_v57  ;;  %v696_v2 = vunpack.c.l.b16 %v447_v63  ;;  %v465_v3 = vld [vmem:[#allocation2 + $0x18] sm:$0xf]  ;;  %v455_v20 = vld [vmem:[#allocation2 + $0x8] sm:$0xe]  ;;  %v665_v25 = vpack.c.b16 %v657_v52, %v657_v52  ;;  %v385_v47 = vld [vmem:[#allocation2 + $0x20] sm:$0xf] }
  0x5a   : > { %v809_v4 = vrot.slane %v801_v58, 1  ;;  %v2028_v6 = vld [vmem:[#allocation2 + $0x1c] sm:$0x1]  ;;  %v617_v7 = vpack.c.b16 %v507_v0, %v609_v60  ;;  %v521_v8 = vpack.c.b16 %v507_v0, %v506_v61  ;;  %v2031_v12 = vunpack.c.l.b16 %v465_v3  ;;  %v276_v48 = vld [vmem:[%s1986_s25 + $0x10] sm:$0xf] }
  0x5b   : > { %v664_v9 = vpack.c.b16 %v656_v1, %v656_v1  ;;  %v722_v10 = vshll.u32 %v705_v62, 16  ;;  %v704_v11 = vpack.c.b16 %v696_v2, %v656_v1  ;;  %v881_v19 = vunpack.c.l.b16 %v2028_v6  ;;  %v388_v53 = vld [vmem:[#allocation2 + $0x24] sm:$0x1]  ;;  %v481_v59 = vld [vmem:[#allocation2 + $0x18] sm:$0xe] }
  0x5c   : > { %818 = vrot.lane.b32.xlu0 %v809_v4, %s1860_s26  ;;  %v625_v15 = vrot.slane %v617_v7, 1  ;;  %v536_v16 = vshrl.u32 %v521_v8, 16  ;;  %v538_v18 = vshll.u32 %v521_v8, 16  ;;  %v720_v23 = vshrl.u32 %v705_v62, 16  ;;  %v2063_v3 = vld [vmem:[#allocation2 + $0x18] sm:$0xf] }
  0x5d   : > { %672 = vrot.lane.b32.xlu2 %v664_v9, %s1861_s8  ;;  %v715_v24 = vshll.u32 %v704_v11, 16  ;;  %v724_v27 = vrot.slane %v722_v10, 1  ;;  %v889_v28 = vpack.c.b16 %v881_v19, %v2031_v12  ;;  %v792_v31 = vunpack.c.l.b16 %v455_v20  ;;  %v391_v7 = vld [vmem:[#allocation2 + $0x28] sm:$0xf] }
  0x5e   : > { %v540_v21 = vrot.slane %v538_v18, 1  ;;  %v888_v33 = vpack.c.b16 %v880_v22, %v840_v49  ;;  %v713_v34 = vshrl.u32 %v704_v11, 16  ;;  %v509_v37 = vunpack.c.l.b16 %v2044_v30 }
  0x5f   : > { %v717_v35 = vrot.slane %v715_v24, 1  ;;  %v725_v38 = vor.u32 %v724_v27, %v720_v23  ;;  %v906_v39 = vshll.u32 %v889_v28, 16  ;;  %v800_v40 = vpack.c.b16 %v696_v2, %v792_v31  ;;  %v480_v2 = vld [vmem:[#allocation2 + $0x10] sm:$0xe]  ;;  %v394_v27 = vld [vmem:[#allocation2 + $0x2c] sm:$0x1] }
  0x60   : > { %v541_v26 = vor.u32 %v540_v21, %v536_v16  ;;  %v899_v43 = vshll.u32 %v888_v33, 16  ;;  %v522_v46 = vpack.c.b16 %v509_v37, %v508_v36  ;;  %v904_v49 = vshrl.u32 %v889_v28, 16  ;;  %v441_v16 = vld [vmem:[#allocation2 + $0x18] sm:$0xf]  ;;  %v2070_v21 = vld [vmem:[#allocation2 + $0x1c] sm:$0x1] }
  0x61   : > { %634 = vrot.lane.b32.xlu1 %v625_v15, %s1857_s29  ;;  %v718_v45 = vor.u32 %v717_v35, %v713_v34  ;;  %v908_v50 = vrot.slane %v906_v39, 1  ;;  %v808_v51 = vrot.slane %v800_v40, 1  ;;  %v310_v52 = vor.u32 %v308_v42, %v307_v44  ;;  %v426_v15 = vld [vmem:[#allocation2 + $0x1c] sm:$0x1] }
  0x62   : > { %v311_v54 = vrot.slane %v307_v44, 4  ;;  %v313_v55 = vshrl.u32 %v276_v48, 16  ;;  %v897_v57 = vshrl.u32 %v888_v33, 16  ;;  %v901_v58 = vrot.slane %v899_v43, 1  ;;  %v433_v33 = vld [vmem:[#allocation2 + $0x10] sm:$0xe] }
  0x63   : > { %v386_v60 = vsel %vm2000_vm6, %v310_v52, %v385_v47  ;;  %v545_v61 = vshll.u32 %v522_v46, 16  ;;  %v316_v0 = vshll.u32 %v276_v48, 16  ;;  %v909_v1 = vor.u32 %v908_v50, %v904_v49  ;;  %v277_v47 = vld [vmem:[%s1986_s25 + $0x14] sm:$0xf] }
  0x64   : > { %586 = vrot.lane.b32.xlu0 %v541_v26, %s1858_s16  ;;  %387 = vst [vmem:[#allocation2 + $0x20] sm:$0xf] %v386_v60  ;;  %v389_v62 = vsel %vm2005_vm7, %v311_v54, %v388_v53  ;;  %v315_v63 = vrot.slane %v313_v55, 7  ;;  %v977_v8 = vunpack.c.l.b16 %v481_v59  ;;  %v902_v9 = vor.u32 %v901_v58, %v897_v57  ;;  %v434_v26 = vld [vmem:[#allocation2 + $0x18] sm:$0xe] }
  0x65   : > { %674 = vrot.lane.b32.xlu2 %v665_v25, %s1861_s8  ;;  %390 = vst [vmem:[#allocation2 + $0x24] sm:$0x1] %v389_v62  ;;  %v543_v10 = vshrl.u32 %v522_v46, 16  ;;  %v547_v11 = vrot.slane %v545_v61, 1  ;;  %v849_v20 = vpack.c.b16 %v2031_v12, %v2031_v12  ;;  %v976_v23 = vunpack.c.l.b16 %v480_v2 }
  0x66   : > { %v318_v4 = vor.u32 %v316_v0, %v315_v63  ;;  %v510_v24 = vunpack.c.l.b16 %v2063_v3  ;;  %v319_v25 = vrot.slane %v315_v63, 4  ;;  %v511_v28 = vunpack.c.l.b16 %v426_v15  ;;  %v397_v63 = vld [vmem:[#allocation2 + $0x30] sm:$0xf]  ;;  %v457_v0 = vld [vmem:[#allocation2 + $0x18] sm:$0xe] }
  0x67   : > { %v985_v32 = vpack.c.b16 %v881_v19, %v977_v8  ;;  %v2078_v12 = vunpack.c.l.b16 %v441_v16  ;;  %v698_v34 = vunpack.c.l.b16 %v2070_v21  ;;  %v548_v35 = vor.u32 %v547_v11, %v543_v10  ;;  %v400_v21 = vld [vmem:[#allocation2 + $0x34] sm:$0x1] }
  0x68   : > { %v392_v18 = vsel %vm2000_vm6, %v318_v4, %v391_v7  ;;  %v395_v31 = vsel %vm2005_vm7, %v319_v25, %v394_v27  ;;  %v611_v36 = vunpack.c.l.b16 %v434_v26  ;;  %v523_v39 = vpack.c.b16 %v511_v28, %v510_v24 }
  0x69   : > { %770 = vrot.lane.b32.xlu1 %v725_v38, %s1862_s28  ;;  %393 = vst [vmem:[#allocation2 + $0x28] sm:$0xf] %v392_v18  ;;  %v984_v38 = vpack.c.b16 %v880_v22, %v976_v23  ;;  %v610_v40 = vunpack.c.l.b16 %v433_v33  ;;  %v993_v41 = vrot.slane %v985_v32, 1  ;;  %v706_v6 = vpack.c.b16 %v698_v34, %v2078_v12 }
  0x6a   : > { %396 = vst [vmem:[#allocation2 + $0x2c] sm:$0x1] %v395_v31  ;;  %v619_v19 = vpack.c.b16 %v511_v28, %v611_v36  ;;  %v552_v43 = vshll.u32 %v523_v39, 16  ;;  %v550_v22 = vshrl.u32 %v523_v39, 16  ;;  %v321_v49 = vshrl.u32 %v277_v47, 16 }
  0x6b   : > { %v992_v42 = vrot.slane %v984_v38, 1  ;;  %v618_v44 = vpack.c.b16 %v509_v37, %v610_v40  ;;  %v727_v50 = vshrl.u32 %v706_v6, 16  ;;  %v442_v52 = vld [vmem:[#allocation2 + $0x20] sm:$0xf]  ;;  %v324_v60 = vshll.u32 %v277_v47, 16 }
  0x6c   : > { %768 = vrot.lane.b32.xlu0 %v718_v45, %s1862_s28  ;;  %v729_v45 = vshll.u32 %v706_v6, 16  ;;  %v627_v14 = vrot.slane %v619_v19, 1  ;;  %v554_v46 = vrot.slane %v552_v43, 1  ;;  %v450_v53 = vld [vmem:[#allocation2 + $0x24] sm:$0x1]  ;;  %v323_v57 = vrot.slane %v321_v49, 7 }
  0x6d   : > { %816 = vrot.lane.b32.xlu2 %v808_v51, %s1860_s26  ;;  %v626_v48 = vrot.slane %v618_v44, 1  ;;  %v458_v30 = vld [vmem:[#allocation2 + $0x20] sm:$0xe]  ;;  %v2092_v55 = vld [vmem:[#allocation2 + $0x24] sm:$0x1]  ;;  %v659_v58 = vunpack.c.l.b16 %v442_v52  ;;  %v699_v59 = vunpack.c.l.b16 %v450_v53  ;;  %v794_v11 = vunpack.c.l.b16 %v457_v0 }
  0x6e   : > { %v731_v51 = vrot.slane %v729_v45, 1  ;;  %v555_v37 = vor.u32 %v554_v46, %v550_v22  ;;  %v466_v54 = vld [vmem:[#allocation2 + $0x20] sm:$0xf]  ;;  %v795_v62 = vunpack.c.l.b16 %v458_v30  ;;  %v882_v2 = vunpack.c.l.b16 %v2092_v55  ;;  %v278_v31 = vld [vmem:[%s1986_s25 + $0x18] sm:$0xf] }
  0x6f   : > { %v707_v4 = vpack.c.b16 %v699_v59, %v659_v58  ;;  %v326_v7 = vor.u32 %v324_v60, %v323_v57  ;;  %v667_v10 = vpack.c.b16 %v659_v58, %v659_v58  ;;  %v666_v18 = vpack.c.b16 %v2078_v12, %v2078_v12  ;;  %v403_v44 = vld [vmem:[#allocation2 + $0x38] sm:$0xf]  ;;  %v2121_v49 = vld [vmem:[#allocation2 + $0x20] sm:$0xf]  ;;  %v427_v30 = vld [vmem:[#allocation2 + $0x24] sm:$0x1] }
  0x70   : > { %v732_v61 = vor.u32 %v731_v51, %v727_v50  ;;  %v803_v15 = vpack.c.b16 %v699_v59, %v795_v62  ;;  %v802_v24 = vpack.c.b16 %v698_v34, %v794_v11  ;;  %v329_v32 = vshrl.u32 %v278_v31, 16  ;;  %v467_v12 = vld [vmem:[#allocation2 + $0x28] sm:$0xf]  ;;  %v435_v62 = vld [vmem:[#allocation2 + $0x20] sm:$0xe] }
  0x71   : > { %954 = vrot.lane.b32.xlu1 %v909_v1, %s1863_s9  ;;  %v2096_v1 = vunpack.c.l.b16 %v466_v54  ;;  %v398_v8 = vsel %vm2000_vm6, %v326_v7, %v397_v63  ;;  %v734_v27 = vshrl.u32 %v707_v4, 16  ;;  %v475_v36 = vld [vmem:[#allocation2 + $0x2c] sm:$0x1]  ;;  %v483_v39 = vld [vmem:[#allocation2 + $0x28] sm:$0xe]  ;;  %v332_v6 = vshll.u32 %v278_v31, 16 }
  0x72   : > { %399 = vst [vmem:[#allocation2 + $0x30] sm:$0xf] %v398_v8  ;;  %v811_v25 = vrot.slane %v803_v15, 1  ;;  %v810_v33 = vrot.slane %v802_v24, 1  ;;  %v843_v34 = vunpack.c.l.b16 %v467_v12  ;;  %v883_v19 = vunpack.c.l.b16 %v475_v36  ;;  %v2115_v22 = vld [vmem:[#allocation2 + $0x28] sm:$0xf] }
  0x73   : > { %v890_v16 = vpack.c.b16 %v882_v2, %v2096_v1  ;;  %v979_v43 = vunpack.c.l.b16 %v483_v39  ;;  %v2117_v46 = vld [vmem:[#allocation2 + $0x2c] sm:$0x1]  ;;  %v850_v58 = vpack.c.b16 %v2096_v1, %v2096_v1  ;;  %v512_v60 = vunpack.c.l.b16 %v2121_v49  ;;  %v443_v31 = vld [vmem:[#allocation2 + $0x28] sm:$0xf] }
  0x74   : > { %952 = vrot.lane.b32.xlu0 %v902_v9, %s1863_s9  ;;  %v327_v9 = vrot.slane %v323_v57, 4  ;;  %v891_v47 = vpack.c.b16 %v883_v19, %v843_v34  ;;  %v851_v50 = vpack.c.b16 %v843_v34, %v843_v34  ;;  %v515_v54 = vunpack.c.l.b16 %v2117_v46  ;;  %v406_v57 = vld [vmem:[#allocation2 + $0x3c] sm:$0x1]  ;;  %v459_v36 = vld [vmem:[#allocation2 + $0x28] sm:$0xe] }
  0x75   : > { %858 = vrot.lane.b32.xlu2 %v849_v20, %s1859_s17  ;;  %v736_v20 = vshll.u32 %v707_v4, 16  ;;  %v913_v26 = vshll.u32 %v890_v16, 16  ;;  %v987_v52 = vpack.c.b16 %v883_v19, %v979_v43  ;;  %v513_v63 = vunpack.c.l.b16 %v427_v30 }
  0x76   : > { %v401_v23 = vsel %vm2005_vm7, %v327_v9, %v400_v21  ;;  %v920_v59 = vshll.u32 %v891_v47, 16  ;;  %v612_v8 = vunpack.c.l.b16 %v435_v62  ;;  %v918_v1 = vshrl.u32 %v891_v47, 16 }
  0x77   : > { %402 = vst [vmem:[#allocation2 + $0x34] sm:$0x1] %v401_v23  ;;  %v738_v28 = vrot.slane %v736_v20, 1  ;;  %v915_v38 = vrot.slane %v913_v26, 1  ;;  %v995_v0 = vrot.slane %v987_v52, 1  ;;  %v796_v19 = vunpack.c.l.b16 %v459_v36 }
  0x78   : > { %v922_v9 = vrot.slane %v920_v59, 1 }
  0x79   : > { %588 = vrot.lane.b32.xlu1 %v548_v35, %s1858_s16  ;;  %v911_v35 = vshrl.u32 %v890_v16, 16  ;;  %v739_v40 = vor.u32 %v738_v28, %v734_v27  ;;  %v620_v16 = vpack.c.b16 %v513_v63, %v612_v8  ;;  %v444_v26 = vld [vmem:[#allocation2 + $0x30] sm:$0xf]  ;;  %v436_v27 = vld [vmem:[#allocation2 + $0x28] sm:$0xe] }
  0x7a   : > { %v661_v12 = vunpack.c.l.b16 %v444_v26  ;;  %v613_v39 = vunpack.c.l.b16 %v436_v27  ;;  %v460_v17 = vld [vmem:[#allocation2 + $0x30] sm:$0xe] }
  0x7b   : > { %v916_v45 = vor.u32 %v915_v38, %v911_v35  ;;  %v279_v35 = vld [vmem:[%s1986_s25 + $0x1c] sm:$0xf]  ;;  %v468_v8 = vld [vmem:[#allocation2 + $0x30] sm:$0xf]  ;;  %s1492_s25 = sshll.u32 %s1993_s15, 4  ;;  %s1493_s25 = int_to_ptr.vmem [resolvable:$true] %s1492_s25 }
  0x7c   : > { %1002 = vrot.lane.b32.xlu0 %v993_v41, %s1864_s10  ;;  %v331_v41 = vrot.slane %v329_v32, 7  ;;  %v451_v32 = vld [vmem:[#allocation2 + $0x2c] sm:$0x1]  ;;  %v340_v34 = vshll.u32 %v279_v35, 16 }
  0x7d   : > { %1000 = vrot.lane.b32.xlu2 %v992_v42, %s1864_s10 }
  0x7e   : > { %v334_v42 = vor.u32 %v332_v6, %v331_v41  ;;  %v335_v51 = vrot.slane %v331_v41, 4  ;;  %v2138_v23 = vld [vmem:[#allocation2 + $0x34] sm:$0x1]  ;;  %v660_v41 = vunpack.c.l.b16 %v443_v31  ;;  %v700_v6 = vunpack.c.l.b16 %v451_v32  ;;  %v2173_v31 = vld [vmem:[#allocation2 + $0x30] sm:$0xf] }
  0x7f   : > { %v2175_v32 = vld [vmem:[#allocation2 + $0x34] sm:$0x1] }
  0x80   : > { %v804_v52 = vpack.c.b16 %v700_v6, %v796_v19 }
  0x81   : > { %638 = vrot.lane.b32.xlu1 %v627_v14, %s1857_s29  ;;  %v482_v14 = vld [vmem:[#allocation2 + $0x20] sm:$0xe] }
  0x82   : > { %v978_v53 = vunpack.c.l.b16 %v482_v14  ;;  %v708_v14 = vpack.c.b16 %v700_v6, %v660_v41  ;;  %v517_v6 = vunpack.c.l.b16 %v2175_v32 }
  0x84   : > { %636 = vrot.lane.b32.xlu0 %v626_v48, %s1857_s29  ;;  %v404_v48 = vsel %vm2000_vm6, %v334_v42, %v403_v44  ;;  %v986_v4 = vpack.c.b16 %v882_v2, %v978_v53  ;;  %v628_v2 = vrot.slane %v620_v16, 1  ;;  %v669_v44 = vpack.c.b16 %v661_v12, %v661_v12 }
  0x85   : > { %590 = vrot.lane.b32.xlu2 %v555_v37, %s1858_s16  ;;  %405 = vst [vmem:[#allocation2 + $0x38] sm:$0xf] %v404_v48  ;;  %v514_v37 = vunpack.c.l.b16 %v2115_v22  ;;  %v668_v48 = vpack.c.b16 %v660_v41, %v660_v41  ;;  %v741_v13 = vshrl.u32 %v708_v14, 16  ;;  %v516_v41 = vunpack.c.l.b16 %v2173_v31 }
  0x86   : > { %v994_v11 = vrot.slane %v986_v4, 1 }
  0x87   : > { %v525_v7 = vpack.c.b16 %v515_v54, %v514_v37 }
  0x89   : > { %772 = vrot.lane.b32.xlu1 %v732_v61, %s1862_s28  ;;  %v407_v61 = vsel %vm2005_vm7, %v335_v51, %v406_v57  ;;  %v566_v15 = vshll.u32 %v525_v7, 16  ;;  %v564_v21 = vshrl.u32 %v525_v7, 16  ;;  %v412_v51 = vld [vmem:[#allocation2 + $0x44] sm:$0x1] }
  0x8a   : > { %408 = vst [vmem:[#allocation2 + $0x3c] sm:$0x1] %v407_v61 }
  0x8b   : > { %v568_v55 = vrot.slane %v566_v15, 1  ;;  %v797_v15 = vunpack.c.l.b16 %v460_v17 }
  0x8c   : > { %678 = vrot.lane.b32.xlu0 %v667_v10, %s1861_s8  ;;  %v524_v10 = vpack.c.b16 %v513_v63, %v512_v60  ;;  %v469_v61 = vld [vmem:[#allocation2 + $0x38] sm:$0xf] }
  0x8d   : > { %676 = vrot.lane.b32.xlu2 %v666_v18, %s1861_s8  ;;  %v923_v18 = vor.u32 %v922_v9, %v918_v1  ;;  %v569_v28 = vor.u32 %v568_v55, %v564_v21  ;;  %v845_v7 = vunpack.c.l.b16 %v469_v61  ;;  %v476_v1 = vld [vmem:[#allocation2 + $0x34] sm:$0x1]  ;;  %v2160_v16 = vld [vmem:[#allocation2 + $0x38] sm:$0xf]  ;;  %v1168_v55 = vld [vmem:[%s2490_s1 + $0x20] sm:$0xf] }
  0x8e   : > { %v559_v20 = vshll.u32 %v524_v10, 16  ;;  %v557_v24 = vshrl.u32 %v524_v10, 16  ;;  %v484_v10 = vld [vmem:[#allocation2 + $0x30] sm:$0xe]  ;;  %v884_v21 = vunpack.c.l.b16 %v476_v1  ;;  %v1210_v26 = vunpack.c.l.b16 %v1168_v55 }
  0x8f   : > { %v518_v27 = vunpack.c.l.b16 %v2160_v16 }
  0x90   : > { %v1215_v36 = vpack.c.b16 %v1210_v26, %v1210_v26  ;;  %v1641_v26 = vld [vmem:[%s2490_s1] sm:$0xff] }
  0x91   : > { %822 = vrot.lane.b32.xlu1 %v811_v25, %s1860_s26  ;;  %v561_v25 = vrot.slane %v559_v20, 1  ;;  %v2154_v62 = vld [vmem:[#allocation2 + $0x3c] sm:$0x1]  ;;  %v844_v20 = vunpack.c.l.b16 %v468_v8 }
  0x92   : > { %v885_v9 = vunpack.c.l.b16 %v2154_v62 }
  0x93   : > { %v562_v38 = vor.u32 %v561_v25, %v557_v24  ;;  %v980_v24 = vunpack.c.l.b16 %v484_v10  ;;  %v438_v10 = vld [vmem:[#allocation2 + $0x38] sm:$0xe] }
  0x94   : > { %820 = vrot.lane.b32.xlu0 %v810_v33, %s1860_s26  ;;  %v701_v33 = vunpack.c.l.b16 %v2138_v23  ;;  %v893_v25 = vpack.c.b16 %v885_v9, %v845_v7 }
  0x95   : > { %774 = vrot.lane.b32.xlu2 %v739_v40, %s1862_s28  ;;  %v337_v40 = vshrl.u32 %v279_v35, 16 }
  0x96   : > { %v709_v42 = vpack.c.b16 %v701_v33, %v661_v12  ;;  %v805_v35 = vpack.c.b16 %v701_v33, %v797_v15  ;;  %v892_v12 = vpack.c.b16 %v884_v21, %v844_v20 }
  0x97   : > { %v339_v43 = vrot.slane %v337_v40, 7  ;;  %v934_v40 = vshll.u32 %v893_v25, 16 }
  0x98   : > { %v750_v53 = vshll.u32 %v709_v42, 16  ;;  %v748_v59 = vshrl.u32 %v709_v42, 16  ;;  %v988_v42 = vpack.c.b16 %v884_v21, %v980_v24  ;;  %v813_v33 = vrot.slane %v805_v35, 1  ;;  %v437_v24 = vld [vmem:[#allocation2 + $0x30] sm:$0xe] }
  0x99   : > { %956 = vrot.lane.b32.xlu1 %v916_v45, %s1863_s9  ;;  %v621_v45 = vpack.c.b16 %v515_v54, %v613_v39  ;;  %v342_v46 = vor.u32 %v340_v34, %v339_v43  ;;  %v343_v47 = vrot.slane %v339_v43, 4  ;;  %v812_v54 = vrot.slane %v804_v52, 1 }
  0x9a   : > { %v752_v60 = vrot.slane %v750_v53, 1  ;;  %v1235_v34 = vsel %vm1233_vm8, %v1215_v36, 0  ;;  %v927_v43 = vshll.u32 %v892_v12, 16  ;;  %v485_v53 = vld [vmem:[#allocation2 + $0x38] sm:$0xe]  ;;  %v615_v35 = vunpack.c.l.b16 %v438_v10 }
  0x9b   : > { %v413_v37 = vsel %vm2005_vm7, %v343_v47, %v412_v51  ;;  %v629_v57 = vrot.slane %v621_v45, 1  ;;  %1240 = vmatpush.bf16.msra.mxu0 %v1235_v34  ;;  %v526_v47 = vpack.c.b16 %v517_v6, %v516_v41  ;;  %v925_v51 = vshrl.u32 %v892_v12, 16 }
  0x9c   : > { %862 = vrot.lane.b32.xlu0 %v851_v50, %s1859_s17  ;;  %v409_v50 = vld [vmem:[#allocation2 + $0x40] sm:$0xf]  ;;  %414 = vst [vmem:[#allocation2 + $0x44] sm:$0x1] %v413_v37  ;;  %v753_v4 = vor.u32 %v752_v60, %v748_v59  ;;  %v929_v52 = vrot.slane %v927_v43, 1  ;;  %v1643_v37 = vld [vmem:[%s2490_s1 + $0x10] sm:$0xff]  ;;  %v981_v61 = vunpack.c.l.b16 %v485_v53 }
  0x9d   : > { %860 = vrot.lane.b32.xlu2 %v850_v58, %s1859_s17  ;;  %v410_v30 = vsel %vm2000_vm6, %v342_v46, %v409_v50  ;;  %v743_v58 = vshll.u32 %v708_v14, 16  ;;  %v932_v14 = vshrl.u32 %v893_v25, 16  ;;  %v936_v46 = vrot.slane %v934_v40, 1 }
  0x9e   : > { %411 = vst [vmem:[#allocation2 + $0x40] sm:$0xf] %v410_v30  ;;  %v930_v60 = vor.u32 %v929_v52, %v925_v51  ;;  %v989_v21 = vpack.c.b16 %v885_v9, %v981_v61  ;;  %v461_v61 = vld [vmem:[#allocation2 + $0x38] sm:$0xe] }
  0x9f   : > { %v745_v63 = vrot.slane %v743_v58, 1  ;;  %v573_v58 = vshll.u32 %v526_v47, 16 }
  0xa0   : > { %v997_v9 = vrot.slane %v989_v21, 1  ;;  %v798_v21 = vunpack.c.l.b16 %v461_v61 }
  0xa1   : > { %1006 = vrot.lane.b32.xlu1 %v995_v0, %s1864_s10  ;;  %v575_v8 = vrot.slane %v573_v58, 1 }
  0xa4   : > { %1004 = vrot.lane.b32.xlu0 %v994_v11, %s1864_s10  ;;  %v746_v11 = vor.u32 %v745_v63, %v741_v13  ;;  %v2203_v63 = vld [vmem:[#allocation2 + $0x44] sm:$0x1] }
  0xa5   : > { %958 = vrot.lane.b32.xlu2 %v923_v18, %s1863_s9  ;;  %v2162_v18 = vld [vmem:[#allocation2 + $0x3c] sm:$0x1]  ;;  %v446_v13 = vld [vmem:[#allocation2 + $0x40] sm:$0xf]  ;;  %v703_v15 = vunpack.c.l.b16 %v2203_v63 }
  0xa9   : > { %640 = vrot.lane.b32.xlu1 %v628_v2, %s1857_s29  ;;  %v853_v2 = vpack.c.b16 %v845_v7, %v845_v7  ;;  %v571_v7 = vshrl.u32 %v526_v47, 16 }
  0xac   : > { %594 = vrot.lane.b32.xlu0 %v569_v28, %s1858_s16  ;;  %v519_v28 = vunpack.c.l.b16 %v2162_v18 }
  0xad   : > { %592 = vrot.lane.b32.xlu2 %v562_v38, %s1858_s16  ;;  %v852_v38 = vpack.c.b16 %v844_v20, %v844_v20  ;;  %v2215_v20 = vld [vmem:[#allocation2 + $0x3c] sm:$0x1] }
  0xae   : > { %v527_v23 = vpack.c.b16 %v519_v28, %v518_v27  ;;  %v576_v27 = vor.u32 %v575_v8, %v571_v7  ;;  %v702_v12 = vunpack.c.l.b16 %v2215_v20  ;;  %v623_v41 = vpack.c.b16 %v519_v28, %v615_v35 }
  0xb0   : > { %v580_v50 = vshll.u32 %v527_v23, 16 }
  0xb1   : > { %682 = vrot.lane.b32.xlu1 %v669_v44, %s1861_s8  ;;  %v1644_v44 = vld [vmem:[%s2490_s1 + $0x18] sm:$0xff] }
  0xb2   : > { %1241 = vmatpush.bf16.msra.mxu0 %v1644_v44  ;;  %v582_v59 = vrot.slane %v580_v50, 1  ;;  %v2242_v50 = vld [vmem:[#allocation2 + $0x4c] sm:$0x1] }
  0xb3   : > { %v887_v58 = vunpack.c.l.b16 %v2242_v50 }
  0xb4   : > { %680 = vrot.lane.b32.xlu0 %v668_v48, %s1861_s8  ;;  %v996_v48 = vrot.slane %v988_v42, 1 }
  0xb5   : > { %642 = vrot.lane.b32.xlu2 %v629_v57, %s1857_s29  ;;  %v937_v57 = vor.u32 %v936_v46, %v932_v14  ;;  %v631_v14 = vrot.slane %v623_v41, 1 }
  0xb6   : > { %1242 = vmatpush.bf16.msra.mxu0 %v1643_v37  ;;  %v462_v37 = vld [vmem:[#allocation2 + $0x40] sm:$0xe] }
  0xb7   : > { %v2156_v0 = vpop.permute.xlu2 %672  ;;  %v799_v7 = vunpack.c.l.b16 %v462_v37 }
  0xb9   : > { %824 = vrot.lane.b32.xlu1 %v812_v54, %s1860_s26  ;;  %v578_v54 = vshrl.u32 %v527_v23, 16 }
  0xbb   : > { %v583_v1 = vor.u32 %v582_v59, %v578_v54  ;;  %v2252_v54 = vld [vmem:[#allocation2 + $0x44] sm:$0x1] }
  0xbc   : > { %778 = vrot.lane.b32.xlu0 %v753_v4, %s1862_s28  ;;  %v1642_v4 = vld [vmem:[%s2490_s1 + $0x8] sm:$0xff]  ;;  %v886_v8 = vunpack.c.l.b16 %v2252_v54 }
  0xbd   : > { %776 = vrot.lane.b32.xlu2 %v746_v11, %s1862_s28  ;;  %v2212_v11 = vunpack.c.l.b16 %v446_v13  ;;  %1243 = vmatpush.bf16.msra.mxu0 %v1642_v4 }
  0xbe   : > { %v2184_v19 = vpop.permute.xlu1 %632 }
  0xbf   : > { %v2179_v39 = vpop.permute.xlu2 %674  ;;  %v711_v62 = vpack.c.b16 %v703_v15, %v2212_v11 }
  0xc1   : > { %866 = vrot.lane.b32.xlu1 %v853_v2, %s1859_s17  ;;  %v445_v2 = vld [vmem:[#allocation2 + $0x38] sm:$0xf]  ;;  %1244 = vmatpush.bf16.msra.mxu0 %v1641_v26  ;;  %v764_v23 = vshll.u32 %v711_v62, 16  ;;  %v762_v18 = vshrl.u32 %v711_v62, 16 }
  0xc2   : > { %v662_v36 = vunpack.c.l.b16 %v445_v2 }
  0xc3   : > { %v2192_v45 = vpop.permute.xlu0 %584  ;;  %v766_v28 = vrot.slane %v764_v23, 1 }
  0xc4   : > { %864 = vrot.lane.b32.xlu0 %v852_v38, %s1859_s17  ;;  %v614_v38 = vunpack.c.l.b16 %v437_v24  ;;  %v710_v34 = vpack.c.b16 %v702_v12, %v662_v36  ;;  %v670_v42 = vpack.c.b16 %v662_v36, %v662_v36  ;;  %v1019_v32 = vsel %vm1016_vm9, %v1996_v5, %v2192_v45 }
  0xc5   : > { %826 = vrot.lane.b32.xlu2 %v813_v33, %s1860_s26  ;;  %v767_v53 = vor.u32 %v766_v28, %v762_v18  ;;  %v1043_v5 = vsel %vm1041_vm10, %v1019_v32, %v2184_v19  ;;  %v671_v19 = vpack.c.b16 %v2212_v11, %v2212_v11  ;;  %v487_v18 = vld [vmem:[#allocation2 + $0x48] sm:$0xe] }
  0xc6   : > { %v622_v33 = vpack.c.b16 %v517_v6, %v614_v38  ;;  %v757_v46 = vshll.u32 %v710_v34, 16  ;;  %v755_v6 = vshrl.u32 %v710_v34, 16  ;;  %v1060_v2 = vsel %vm1058_vm11, %v1043_v5, %v2156_v0 }
  0xc7   : > { %v2197_v30 = vpop.permute.xlu2 %816  ;;  %v806_v0 = vpack.c.b16 %v702_v12, %v798_v21 }
  0xc8   : > { %v630_v47 = vrot.slane %v622_v33, 1  ;;  %v759_v52 = vrot.slane %v757_v46, 1 }
  0xc9   : > { %1008 = vrot.lane.b32.xlu1 %v996_v48, %s1864_s10  ;;  %v471_v48 = vld [vmem:[#allocation2 + $0x48] sm:$0xf] }
  0xca   : > { %v760_v4 = vor.u32 %v759_v52, %v755_v6 }
  0xcb   : > { %v2205_v17 = vpop.permute.xlu1 %856 }
  0xcc   : > { %962 = vrot.lane.b32.xlu0 %v937_v57, %s1863_s9  ;;  %v2249_v57 = vunpack.c.l.b16 %v471_v48 }
  0xcd   : > { %960 = vrot.lane.b32.xlu2 %v930_v60, %s1863_s9  ;;  %v470_v60 = vld [vmem:[#allocation2 + $0x40] sm:$0xf] }
  0xce   : > { %v2219_v55 = vpop.permute.xlu0 %818  ;;  %v895_v10 = vpack.c.b16 %v887_v58, %v2249_v57 }
  0xcf   : > { %v2221_v25 = vpop.permute.xlu2 %858 }
  0xd0   : > { %v948_v36 = vshll.u32 %v895_v10, 16  ;;  %v946_v20 = vshrl.u32 %v895_v10, 16 }
  0xd1   : > { %598 = vrot.lane.b32.xlu1 %v583_v1, %s1858_s16  ;;  %v846_v1 = vunpack.c.l.b16 %v470_v60 }
  0xd2   : > { %v950_v12 = vrot.slane %v948_v36, 1 }
  0xd3   : > { %v635_v40 = vpop.permute.xlu1 %634  ;;  %v894_v35 = vpack.c.b16 %v886_v8, %v846_v1  ;;  %v854_v11 = vpack.c.b16 %v846_v1, %v846_v1 }
  0xd4   : > { %596 = vrot.lane.b32.xlu0 %v576_v27, %s1858_s16  ;;  %v807_v27 = vpack.c.b16 %v703_v15, %v799_v7  ;;  %v951_v46 = vor.u32 %v950_v12, %v946_v20 }
  0xd5   : > { %1010 = vrot.lane.b32.xlu2 %v997_v9, %s1864_s10  ;;  %v941_v41 = vshll.u32 %v894_v35, 16  ;;  %v939_v33 = vshrl.u32 %v894_v35, 16 }
  0xd6   : > { %v587_v43 = vpop.permute.xlu0 %586 }
  0xd7   : > { %v2239_v44 = vpop.permute.xlu2 %1000  ;;  %v1022_v13 = vsel %vm1016_vm9, %v2024_v56, %v587_v43  ;;  %v943_v43 = vrot.slane %v941_v41, 1 }
  0xd8   : > { %v1045_v56 = vsel %vm1041_vm10, %v1022_v13, %v635_v40  ;;  %v815_v40 = vrot.slane %v807_v27, 1 }
  0xd9   : > { %684 = vrot.lane.b32.xlu1 %v670_v42, %s1861_s8  ;;  %v1062_v62 = vsel %vm1058_vm11, %v1045_v56, %v2179_v39  ;;  %v814_v39 = vrot.slane %v806_v0, 1  ;;  %v944_v52 = vor.u32 %v943_v43, %v939_v33 }
  0xdb   : > { %v771_v51 = vpop.permute.xlu1 %770 }
  0xdc   : > { %646 = vrot.lane.b32.xlu0 %v631_v14, %s1857_s29  ;;  %v1079_v63 = vsel %vm1075_vm12, %v1062_v62, %v771_v51 }
  0xdd   : > { %644 = vrot.lane.b32.xlu2 %v630_v47, %s1857_s29  ;;  %v486_v47 = vld [vmem:[#allocation2 + $0x40] sm:$0xe]  ;;  %s1806_s29 = scalar_lea.hbm %s2494_s5, 192 }
  0xde   : > { %v769_v59 = vpop.permute.xlu0 %768 }
  0xdf   : > { %v2256_v45 = vpop.permute.xlu2 %590  ;;  %v1077_v24 = vsel %vm1075_vm12, %v1060_v2, %v769_v59 }
  0xe0   : > { %v1094_v9 = vsel %vm1092_vm13, %v1077_v24, %v2197_v30  ;;  %v1096_v30 = vsel %vm1092_vm13, %v1079_v63, %v2219_v55 }
  0xe1   : > { %782 = vrot.lane.b32.xlu1 %v767_v53, %s1862_s28  ;;  %v1111_v34 = vsel %vm1109_vm14, %v1094_v9, %v2205_v17  ;;  %v1113_v14 = vsel %vm1109_vm14, %v1096_v30, %v2221_v25  ;;  %v983_v53 = vunpack.c.l.b16 %v487_v18  ;;  %v855_v25 = vpack.c.b16 %v2249_v57, %v2249_v57 }
  0xe3   : > { %v955_v26 = vpop.permute.xlu1 %954  ;;  %v991_v60 = vpack.c.b16 %v887_v58, %v983_v53  ;;  %v1028_v58 = vsel %vm1016_vm9, %v2063_v3, %v2256_v45 }
  0xe4   : > { %780 = vrot.lane.b32.xlu0 %v760_v4, %s1862_s28  ;;  %v1130_v55 = vsel %vm1126_vm15, %v1113_v14, %v955_v26 }
  0xe5   : > { %686 = vrot.lane.b32.xlu2 %v671_v19, %s1861_s8  ;;  %v999_v4 = vrot.slane %v991_v60, 1 }
  0xe6   : > { %v953_v38 = vpop.permute.xlu0 %952 }
  0xe7   : > { %v2284_v15 = vpop.permute.xlu2 %676  ;;  %v1128_v42 = vsel %vm1126_vm15, %v1111_v34, %v953_v38 }
  0xe8   : > { %v1145_v17 = vsel %vm1143_vm0, %v1128_v42, %v2239_v44  ;;  %v982_v44 = vunpack.c.l.b16 %v486_v47 }
  0xe9   : > { %868 = vrot.lane.b32.xlu1 %v854_v11, %s1859_s17  ;;  %v1181_v32 = vunpack.c.l.b16 %v1145_v17 }
  0xea   : > { %v990_v61 = vpack.c.b16 %v886_v8, %v982_v44 }
  0xeb   : > { %v589_v23 = vpop.permute.xlu1 %588 }
  0xec   : > { %830 = vrot.lane.b32.xlu0 %v815_v40, %s1860_s26  ;;  %v998_v7 = vrot.slane %v990_v61, 1  ;;  %v1025_v54 = vsel %vm1016_vm9, %v2042_v29, %v589_v23 }
  0xed   : > { %828 = vrot.lane.b32.xlu2 %v814_v39, %s1860_s26  ;;  %s1696_s26 = smul.u32 96, %s1917_s22 }
  0xee   : > { %v1003_v28 = vpop.permute.xlu0 %1002 }
  0xef   : > { %v1147_v48 = vsel %vm1143_vm0, %v1130_v55, %v1003_v28  ;;  %v775_v51 = vpop.permute.xlu2 %774 }
  0xf0   : > { %v1182_v6 = vunpack.c.l.b16 %v1147_v48 }
  0xf1   : > { %966 = vrot.lane.b32.xlu1 %v951_v46, %s1863_s9 }
  0xf2   : > { %v1189_v37 = vpack.c.b16 %v1182_v6, %v1181_v32 }
  0xf3   : > { %v639_v59 = vpop.permute.xlu1 %638 }
  0xf4   : > { %964 = vrot.lane.b32.xlu0 %v944_v52, %s1863_s9  ;;  %1593 = vmatmul.msk.bf16.vlgmr.msra.gmra.mxu0 %vm1220_vm1, %v1189_v37  ;;  %v1049_v8 = vsel %vm1041_vm10, %v1028_v58, %v639_v59  ;;  %s1491_s9 = scalar_lea.hbm %s2494_s5, %s1696_s26 }
  0xf5   : > { %870 = vrot.lane.b32.xlu2 %v855_v25, %s1859_s17  ;;  %s1494_s22 = sshll.u32 %s1491_s9, 4  ;;  %s1495_s22 = int_to_ptr.hbm [resolvable:$true] %s1494_s22 }
  0xf6   : > { %v637_v5 = vpop.permute.xlu0 %636  ;;  %s1800_s7 = sshra.s32 %s1495_s22, 4  ;;  %s1801_s7 = int_to_ptr.hbm [resolvable:$true] %s1800_s7 }
  0xf7   : > { %v861_v13 = vpop.permute.xlu2 %860  ;;  %v1047_v24 = vsel %vm1041_vm10, %v1025_v54, %v637_v5  ;;  %s1802_s11 = scalar_lea.hbm %s1801_s7, 96  ;;  %p1807_p1 = scmp.lt.s32.totalorder %s1801_s7, %s2494_s5 }
  0xf8   : > { %v1064_v35 = vsel %vm1058_vm11, %v1047_v24, %v2284_v15  ;;  %v1646_v24 = vld [vmem:[%s2492_s3 + $0x8] sm:$0xf0]  ;;  %p1803_p6 = scmp.ne.s32.totalorder %s1801_s7, %s1802_s11  ;;  %p1808_p3 = scmp.lt.s32.totalorder %s1806_s29, %s1802_s11 }
  0xfa   : > { %p1804_p13 = pnand %p1803_p6, %p1946_p11  ;;  %p1809_p4 = por %p1808_p3, %p1807_p1 }
  0xfb   : > { %v773_v57 = vpop.permute.xlu1 %772 }
  0xfc   : > { %1014 = vrot.lane.b32.xlu0 %v999_v4, %s1864_s10  ;;  %v1081_v3 = vsel %vm1075_vm12, %v1064_v35, %v773_v57  ;;  %v1601_v35 = vld [vmem:[%s2492_s3 + $0xc] sm:$0xf0]  ;;  %p1805_p0 = pneg %p1804_p13 }
  0xfd   : > { %1012 = vrot.lane.b32.xlu2 %v998_v7, %s1864_s10 }
  0xfe   : > { %v679_v1 = vpop.permute.xlu0 %678  ;;  %p1810_p7 = pnand %p1809_p4, %p1805_p0 }
  0xff   : > { %v959_v10 = vpop.permute.xlu2 %958  ;;  %v1066_v56 = vsel %vm1058_vm11, %v1049_v8, %v679_v1 }
 0x100   : > { %v1083_v27 = vsel %vm1075_vm12, %v1066_v56, %v775_v51  ;;  %v1599_v56 = vld [vmem:[%s2492_s3] sm:$0xf] }
 0x103   : > { %v823_v19 = vpop.permute.xlu1 %822 }
 0x104   : > { %v1100_v11 = vsel %vm1092_vm13, %v1083_v27, %v823_v19  ;;  %v1600_v27 = vor.u32 %v1646_v24, %v1599_v56 }
 0x106   : > { %v821_v21 = vpop.permute.xlu0 %820  ;;  %1333 = vmatpush.bf16.msra.mxu1 %v1600_v27 }
 0x107   : > { %v593_v50 = vpop.permute.xlu2 %592  ;;  %v1098_v45 = vsel %vm1092_vm13, %v1081_v3, %v821_v21 }
 0x108   : > { %v1115_v9 = vsel %vm1109_vm14, %v1098_v45, %v861_v13  ;;  %v1031_v46 = vsel %vm1016_vm9, %v2121_v49, %v593_v50 }
 0x10b   : > { %v957_v2 = vpop.permute.xlu1 %956 }
 0x10c   : > { %v1132_v63 = vsel %vm1126_vm15, %v1115_v9, %v957_v2 }
 0x10e   : > { %v863_v26 = vpop.permute.xlu0 %862 }
 0x10f   : > { %v643_v36 = vpop.permute.xlu2 %642  ;;  %v1117_v29 = vsel %vm1109_vm14, %v1100_v11, %v863_v26  ;;  %v1645_v26 = vld [vmem:[%s2492_s3 + $0x4] sm:$0xf]  ;;  %v1607_v11 = vld [vmem:[%s2492_s3 + $0x8] sm:$0xf] }
 0x110   : > { %v1134_v62 = vsel %vm1126_vm15, %v1117_v29, %v959_v10  ;;  %v1604_v29 = vor.u32 %v1645_v26, %v1601_v35 }
 0x112   : > { %1362 = vmatpush.bf16.msra.mxu2 %v1604_v29 }
 0x113   : > { %v1007_v0 = vpop.permute.xlu1 %1006 }
 0x114   : > { %v1151_v38 = vsel %vm1143_vm0, %v1134_v62, %v1007_v0 }
 0x115   : > { %v1184_v41 = vunpack.c.l.b16 %v1151_v38 }
 0x116   : > { %v1005_v40 = vpop.permute.xlu0 %1004 }
 0x117   : > { %v1149_v15 = vsel %vm1143_vm0, %v1132_v63, %v1005_v40  ;;  %v777_v12 = vpop.permute.xlu2 %776 }
 0x118   : > { %v1183_v34 = vunpack.c.l.b16 %v1149_v15 }
 0x11a   : > { %v1190_v20 = vpack.c.b16 %v1184_v41, %v1183_v34 }
 0x11b   : > { %v641_v39 = vpop.permute.xlu1 %640 }
 0x11c   : > { %1594 = vmatmul.msk.bf16.gmra.mxu0 %vm1220_vm1, %v1190_v20  ;;  %v1051_v55 = vsel %vm1041_vm10, %v1031_v46, %v641_v39 }
 0x11e   : > { %v595_v30 = vpop.permute.xlu0 %594 }
 0x11f   : > { %v827_v23 = vpop.permute.xlu2 %826  ;;  %v1034_v28 = vsel %vm1016_vm9, %v2115_v22, %v595_v30 }
 0x120   : > { %v1053_v51 = vsel %vm1041_vm10, %v1034_v28, %v643_v36  ;;  %v1647_v36 = vld [vmem:[%s2492_s3 + $0x10] sm:$0xf0] }
 0x121   : > { %v1608_v45 = vor.u32 %v1647_v36, %v1607_v11 }
 0x123   : > { %v683_v42 = vpop.permute.xlu1 %682  ;;  %1391 = vmatpush.bf16.msra.mxu3 %v1608_v45 }
 0x124   : > { %v1070_v52 = vsel %vm1058_vm11, %v1053_v51, %v683_v42 }
 0x126   : > { %v681_v33 = vpop.permute.xlu0 %680 }
 0x127   : > { %v961_v17 = vpop.permute.xlu2 %960  ;;  %v1068_v47 = vsel %vm1058_vm11, %v1051_v55, %v681_v33 }
 0x128   : > { %v1085_v32 = vsel %vm1075_vm12, %v1068_v47, %v777_v12  ;;  %v1755_v47 = vld [vmem:[%s2491_s2] ss:$0 sm:$0xff] }
 0x12b   : > { %v825_v43 = vpop.permute.xlu1 %824 }
 0x12c   : > { %v1102_v53 = vsel %vm1092_vm13, %v1085_v32, %v825_v43 }
 0x12e   : > { %v779_v14 = vpop.permute.xlu0 %778 }
 0x12f   : > { %v1011_v6 = vpop.permute.xlu2 %1010  ;;  %v1087_v49 = vsel %vm1075_vm12, %v1070_v52, %v779_v14 }
 0x130   : > { %v1104_v37 = vsel %vm1092_vm13, %v1087_v49, %v827_v23 }
 0x133   : > { %v867_v18 = vpop.permute.xlu1 %866 }
 0x134   : > { %v1121_v59 = vsel %vm1109_vm14, %v1104_v37, %v867_v18 }
 0x136   : > { %v865_v48 = vpop.permute.xlu0 %864 }
 0x137   : > { %v1119_v25 = vsel %vm1109_vm14, %v1102_v53, %v865_v48  ;;  %v645_v57 = vpop.permute.xlu2 %644 }
 0x138   : > { %v1136_v22 = vsel %vm1126_vm15, %v1119_v25, %v961_v17 }
 0x13b   : > { %v1009_v44 = vpop.permute.xlu1 %1008 }
 0x13c   : > { %v1153_v60 = vsel %vm1143_vm0, %v1136_v22, %v1009_v44 }
 0x13d   : > { %v1185_v4 = vunpack.c.l.b16 %v1153_v60 }
 0x13e   : > { %v963_v61 = vpop.permute.xlu0 %962 }
 0x13f   : > { %v1138_v5 = vsel %vm1126_vm15, %v1121_v59, %v963_v61  ;;  %v687_v21 = vpop.permute.xlu2 %686 }
 0x140   : > { %v1155_v13 = vsel %vm1143_vm0, %v1138_v5, %v1011_v6 }
 0x141   : > { %v1186_v7 = vunpack.c.l.b16 %v1155_v13 }
 0x143   : > { %v599_v1 = vpop.permute.xlu1 %598  ;;  %v1191_v10 = vpack.c.b16 %v1186_v7, %v1185_v4 }
 0x144   : > { %v1040_v38 = vsel %vm1016_vm9, %v2160_v16, %v599_v1 }
 0x145   : > { %1595 = vmatmul.msk.bf16.gmra.mxu0 %vm1220_vm1, %v1191_v10 }
 0x146   : > { %v597_v19 = vpop.permute.xlu0 %596 }
 0x147   : > { %v829_v8 = vpop.permute.xlu2 %828  ;;  %v1037_v0 = vsel %vm1016_vm9, %v2173_v31, %v597_v19 }
 0x148   : > { %v1055_v63 = vsel %vm1041_vm10, %v1037_v0, %v645_v57 }
 0x14b   : > { %v685_v50 = vpop.permute.xlu1 %684 }
 0x14c   : > { %v1072_v40 = vsel %vm1058_vm11, %v1055_v63, %v685_v50 }
 0x14e   : > { %v647_v58 = vpop.permute.xlu0 %646 }
 0x14f   : > { %v871_v62 = vpop.permute.xlu2 %870  ;;  %v1057_v15 = vsel %vm1041_vm10, %v1040_v38, %v647_v58 }
 0x150   : > { %v1074_v20 = vsel %vm1058_vm11, %v1057_v15, %v687_v21 }
 0x153   : > { %v783_v2 = vpop.permute.xlu1 %782 }
 0x154   : > { %v1091_v12 = vsel %vm1075_vm12, %v1074_v20, %v783_v2 }
 0x156   : > { %v781_v54 = vpop.permute.xlu0 %780 }
 0x157   : > { %v1089_v41 = vsel %vm1075_vm12, %v1072_v40, %v781_v54  ;;  %v1013_v42 = vpop.permute.xlu2 %1012 }
 0x158   : > { %v1106_v31 = vsel %vm1092_vm13, %v1089_v41, %v829_v8 }
 0x15b   : > { %v869_v9 = vpop.permute.xlu1 %868 }
 0x15c   : > { %v1123_v39 = vsel %vm1109_vm14, %v1106_v31, %v869_v9 }
 0x15e   : > { %v831_v3 = vpop.permute.xlu0 %830 }
 0x15f   : > { %v1108_v30 = vsel %vm1092_vm13, %v1091_v12, %v831_v3  ;;  %v1290_v3 = vld [vmem:[%s2493_s4] sm:$0x7] }
 0x160   : > { %v1125_v33 = vsel %vm1109_vm14, %v1108_v30, %v871_v62  ;;  %v2404_v0 = vperm.slane %v1290_v3, 0  ;;  %v2408_v62 = vperm.slane %v1290_v3, 1  ;;  %v2414_v12 = vperm.slane %v1290_v3, 2 }
 0x163   : > { %v967_v23 = vpop.permute.xlu1 %966 }
 0x164   : > { %v1142_v14 = vsel %vm1126_vm15, %v1125_v33, %v967_v23 }
 0x166   : > { %v965_v34 = vpop.permute.xlu0 %964 }
 0x167   : > { %v1140_v16 = vsel %vm1126_vm15, %v1123_v39, %v965_v34 }
 0x168   : > { %v1157_v43 = vsel %vm1143_vm0, %v1140_v16, %v1013_v42 }
 0x169   : > { %v1187_v18 = vunpack.c.l.b16 %v1157_v43 }
 0x16e   : > { %v1015_v17 = vpop.permute.xlu0 %1014 }
 0x16f   : > { %v1159_v46 = vsel %vm1143_vm0, %v1142_v14, %v1015_v17 }
 0x170   : > { %v1188_v55 = vunpack.c.l.b16 %v1159_v46 }
 0x171   : > { %v1246_v28 = vpop.f32.mrf.mxu0 }
 0x172   : > { %v1192_v48 = vpack.c.b16 %v1188_v55, %v1187_v18  ;;  %v1247_v51 = vadd.f32 %v1755_v47, %v1246_v28 }
 0x174   : > { %1596 = vmatmul.msk.bf16.gmra.mxu0 %vm1220_vm1, %v1192_v48  ;;  %v1266_v6 = vmul.f32 0.1, %v1247_v51 }
 0x176   : > { %v1274_v49 = vmax.f32 %v1247_v51, %v1266_v6 }
 0x179   : > { %v1248_v32 = vpop.f32.mrf.mxu0 }
 0x17a   : > { %v1249_v52 = vadd.f32 %v1755_v47, %v1248_v32 }
 0x17c   : > { %v1267_v53 = vmul.f32 0.1, %v1249_v52 }
 0x17e   : > { %v1275_v25 = vmax.f32 %v1249_v52, %v1267_v53 }
 0x180   : > { %v1282_v44 = vpack.c.bf16 %v1275_v25, %v1274_v49 }
 0x182   : > { %1609 = vmatmul.msk.bf16.vlgmr.msra.gmra.mxu1 %vm1041_vm10, %v1282_v44  ;;  %1613 = vmatmul.msk.bf16.vlgmr.msra.gmra.mxu2 %vm1041_vm10, %v1282_v44 }
 0x183   : > { %1617 = vmatmul.msk.bf16.vlgmr.msra.gmra.mxu3 %vm1041_vm10, %v1282_v44 }
 0x199   : > { %v1251_v37 = vpop.f32.mrf.mxu0 }
 0x19a   : > { %v1252_v22 = vadd.f32 %v1755_v47, %v1251_v37 }
 0x19c   : > { %v1268_v60 = vmul.f32 0.1, %v1252_v22 }
 0x19e   : > { %v1276_v13 = vmax.f32 %v1252_v22, %v1268_v60 }
 0x1a1   : > { %v1253_v59 = vpop.f32.mrf.mxu0 }
 0x1a2   : > { %v1254_v61 = vadd.f32 %v1755_v47, %v1253_v59 }
 0x1a4   : > { %v1269_v5 = vmul.f32 0.1, %v1254_v61 }
 0x1a6   : > { %v1277_v4 = vmax.f32 %v1254_v61, %v1269_v5 }
 0x1a8   : > { %v1283_v7 = vpack.c.bf16 %v1277_v4, %v1276_v13 }
 0x1aa   : > { %1610 = vmatmul.msk.bf16.gmra.mxu1 %vm1041_vm10, %v1283_v7  ;;  %1614 = vmatmul.msk.bf16.gmra.mxu2 %vm1041_vm10, %v1283_v7 }
 0x1ab   : > { %1618 = vmatmul.msk.bf16.gmra.mxu3 %vm1041_vm10, %v1283_v7 }
 0x1c2   : > { %v1256_v57 = vpop.f32.mrf.mxu0 }
 0x1c3   : > { %v1257_v1 = vadd.f32 %v1755_v47, %v1256_v57 }
 0x1c5   : > { %v1270_v19 = vmul.f32 0.1, %v1257_v1 }
 0x1c7   : > { %v1278_v58 = vmax.f32 %v1257_v1, %v1270_v19 }
 0x1ca   : > { %v1258_v10 = vpop.f32.mrf.mxu0 }
 0x1cb   : > { %v1259_v21 = vadd.f32 %v1755_v47, %v1258_v10 }
 0x1cd   : > { %v1271_v50 = vmul.f32 0.1, %v1259_v21 }
 0x1cf   : > { %v1279_v54 = vmax.f32 %v1259_v21, %v1271_v50 }
 0x1d1   : > { %v1284_v8 = vpack.c.bf16 %v1279_v54, %v1278_v58 }
 0x1d3   : > { %1611 = vmatmul.msk.bf16.gmra.mxu1 %vm1041_vm10, %v1284_v8  ;;  %1615 = vmatmul.msk.bf16.gmra.mxu2 %vm1041_vm10, %v1284_v8 }
 0x1d4   : > { %1619 = vmatmul.msk.bf16.gmra.mxu3 %vm1041_vm10, %v1284_v8 }
 0x1f1   : > { %v1261_v2 = vpop.f32.mrf.mxu0 }
 0x1f2   : > { %v1262_v56 = vadd.f32 %v1755_v47, %v1261_v2 }
 0x1f4   : > { %v1272_v26 = vmul.f32 0.1, %v1262_v56 }
 0x1f6   : > { %v1280_v11 = vmax.f32 %v1262_v56, %v1272_v26 }
 0x1f9   : > { %v1263_v24 = vpop.f32.mrf.mxu0 }
 0x1fa   : > { %v1264_v27 = vadd.f32 %v1755_v47, %v1263_v24 }
 0x1fc   : > { %v1273_v35 = vmul.f32 0.1, %v1264_v27 }
 0x1fe   : > { %v1281_v36 = vmax.f32 %v1264_v27, %v1273_v35 }
 0x1ff   : > { %v1335_v29 = vpop.f32.mrf.mxu1 }
 0x200   : > { %v1285_v45 = vpack.c.bf16 %v1281_v36, %v1280_v11  ;;  %v1336_v38 = vadd.f32 %v1335_v29, %v2404_v0 }
 0x202   : > { %1612 = vmatmul.msk.bf16.gmra.mxu1 %vm1041_vm10, %v1285_v45  ;;  %1616 = vmatmul.msk.bf16.gmra.mxu2 %vm1041_vm10, %v1285_v45 }
 0x203   : > { %1620 = vmatmul.msk.bf16.gmra.mxu3 %vm1041_vm10, %v1285_v45 }
 0x205   : > { %v1364_v9 = vpop.f32.mrf.mxu2 }
 0x206   : > { %v1365_v63 = vadd.f32 %v1364_v9, %v2408_v62  ;;  %v1393_v40 = vpop.f32.mrf.mxu3 }
 0x207   : > { %v1337_v15 = vpop.f32.mrf.mxu1  ;;  %v1394_v42 = vadd.f32 %v1393_v40, %v2414_v12 }
 0x208   : > { %v1413_v41 = vpack.c.bf16 %v1365_v63, %v1336_v38  ;;  %v1338_v34 = vadd.f32 %v1337_v15, %v2404_v0 }
 0x20a   : > { %v1445_v20 = vrot.slane %v1413_v41, 4  ;;  %v1651_v31 = vpack.c.bf16 %v1338_v34, %v1336_v38 }
 0x20c   : > { %1621 = vst [vmem:[%s1993_s15 + $0x20] sm:$0xf] %v1445_v20 }
 0x20d   : > { %1652 = vst [vmem:[%s1993_s15] sm:$0xff] %v1651_v31   ;;  %v1366_v39 = vpop.f32.mrf.mxu2 }
 0x20e   : > { %v1367_v30 = vadd.f32 %v1366_v39, %v2408_v62  ;;  %v1395_v16 = vpop.f32.mrf.mxu3 }
 0x20f   : > { %v1396_v23 = vadd.f32 %v1395_v16, %v2414_v12 }
 0x210   : > { %v1415_v33 = vpack.c.bf16 %v1367_v30, %v1338_v34 }
 0x211   : > { %v1671_v43 = vpack.c.bf16 %v1396_v23, %v1394_v42 }
 0x212   : > { %v1446_v14 = vrot.slane %v1415_v33, 4 }
 0x213   : > { %1691 = vst [vmem:[%s1993_s15 + $0x40] sm:$0xff] %v1671_v43  }
 0x214   : > { %1622 = vst [vmem:[%s1993_s15 + $0x24] sm:$0xf] %v1446_v14 }
 0x227   : > { %v1340_v17 = vpop.f32.mrf.mxu1 }
 0x228   : > { %v1341_v18 = vadd.f32 %v1340_v17, %v2404_v0 }
 0x22d   : > { %v1369_v46 = vpop.f32.mrf.mxu2 }
 0x22e   : > { %v1370_v55 = vadd.f32 %v1369_v46, %v2408_v62  ;;  %v1398_v28 = vpop.f32.mrf.mxu3 }
 0x22f   : > { %v1342_v47 = vpop.f32.mrf.mxu1  ;;  %v1399_v25 = vadd.f32 %v1398_v28, %v2414_v12 }
 0x230   : > { %v1417_v48 = vpack.c.bf16 %v1370_v55, %v1341_v18  ;;  %v1343_v51 = vadd.f32 %v1342_v47, %v2404_v0 }
 0x232   : > { %v1447_v32 = vrot.slane %v1417_v48, 4  ;;  %v1656_v6 = vpack.c.bf16 %v1343_v51, %v1341_v18 }
 0x234   : > { %1623 = vst [vmem:[%s1993_s15 + $0x28] sm:$0xf] %v1447_v32 }
 0x235   : > { %1688 = vst [vmem:[%s1993_s15 + $0x8] sm:$0xff] %v1656_v6   ;;  %v1371_v52 = vpop.f32.mrf.mxu2 }
 0x236   : > { %v1372_v53 = vadd.f32 %v1371_v52, %v2408_v62  ;;  %v1400_v49 = vpop.f32.mrf.mxu3 }
 0x237   : > { %v1401_v44 = vadd.f32 %v1400_v49, %v2414_v12 }
 0x238   : > { %v1419_v37 = vpack.c.bf16 %v1372_v53, %v1343_v51 }
 0x239   : > { %v1676_v22 = vpack.c.bf16 %v1401_v44, %v1399_v25 }
 0x23a   : > { %v1448_v59 = vrot.slane %v1419_v37, 4 }
 0x23b   : > { %1692 = vst [vmem:[%s1993_s15 + $0x48] sm:$0xff] %v1676_v22  }
 0x23c   : > { %1624 = vst [vmem:[%s1993_s15 + $0x2c] sm:$0xf] %v1448_v59 }
 0x250   : > { %v1345_v60 = vpop.f32.mrf.mxu1 }
 0x251   : > { %v1346_v5 = vadd.f32 %v1345_v60, %v2404_v0 }
 0x256   : > { %v1374_v61 = vpop.f32.mrf.mxu2 }
 0x257   : > { %v1375_v13 = vadd.f32 %v1374_v61, %v2408_v62  ;;  %v1403_v4 = vpop.f32.mrf.mxu3 }
 0x258   : > { %v1347_v7 = vpop.f32.mrf.mxu1  ;;  %v1404_v54 = vadd.f32 %v1403_v4, %v2414_v12 }
 0x259   : > { %v1421_v57 = vpack.c.bf16 %v1375_v13, %v1346_v5  ;;  %v1348_v1 = vadd.f32 %v1347_v7, %v2404_v0 }
 0x25b   : > { %v1449_v10 = vrot.slane %v1421_v57, 4  ;;  %v1661_v19 = vpack.c.bf16 %v1348_v1, %v1346_v5 }
 0x25d   : > { %1625 = vst [vmem:[%s1993_s15 + $0x30] sm:$0xf] %v1449_v10 }
 0x25e   : > { %1689 = vst [vmem:[%s1993_s15 + $0x10] sm:$0xff] %v1661_v19   ;;  %v1376_v21 = vpop.f32.mrf.mxu2 }
 0x25f   : > { %v1377_v50 = vadd.f32 %v1376_v21, %v2408_v62  ;;  %v1405_v58 = vpop.f32.mrf.mxu3 }
 0x260   : > { %v1406_v8 = vadd.f32 %v1405_v58, %v2414_v12 }
 0x261   : > { %v1423_v2 = vpack.c.bf16 %v1377_v50, %v1348_v1 }
 0x262   : > { %v1681_v56 = vpack.c.bf16 %v1406_v8, %v1404_v54 }
 0x263   : > { %v1450_v24 = vrot.slane %v1423_v2, 4 }
 0x264   : > { %1693 = vst [vmem:[%s1993_s15 + $0x50] sm:$0xff] %v1681_v56  }
 0x265   : > { %1626 = vst [vmem:[%s1993_s15 + $0x34] sm:$0xf] %v1450_v24 }
 0x27f   : > { %v1350_v26 = vpop.f32.mrf.mxu1 }
 0x280   : > { %v1351_v35 = vadd.f32 %v1350_v26, %v2404_v0 }
 0x285   : > { %v1379_v27 = vpop.f32.mrf.mxu2 }
 0x286   : > { %v1380_v11 = vadd.f32 %v1379_v27, %v2408_v62  ;;  %v1408_v36 = vpop.f32.mrf.mxu3 }
 0x287   : > { %v1352_v3 = vpop.f32.mrf.mxu1 }
 0x288   : > { %v1425_v29 = vpack.c.bf16 %v1380_v11, %v1351_v35  ;;  %v1353_v45 = vadd.f32 %v1352_v3, %v2404_v0  ;;  %v1409_v0 = vadd.f32 %v1408_v36, %v2414_v12 }
 0x28a   : > { %v1451_v9 = vrot.slane %v1425_v29, 4  ;;  %v1666_v38 = vpack.c.bf16 %v1353_v45, %v1351_v35 }
 0x28c   : > { %1627 = vst [vmem:[%s1993_s15 + $0x38] sm:$0xf] %v1451_v9 }
 0x28d   : > { %1690 = vst [vmem:[%s1993_s15 + $0x18] sm:$0xff] %v1666_v38   ;;  %v1381_v63 = vpop.f32.mrf.mxu2 }
 0x28e   : > { %v1382_v40 = vadd.f32 %v1381_v63, %v2408_v62  ;;  %v1410_v15 = vpop.f32.mrf.mxu3 }
 0x28f   : > { %v1411_v41 = vadd.f32 %v1410_v15, %v2414_v12 }
 0x290   : > { %v1427_v34 = vpack.c.bf16 %v1382_v40, %v1353_v45 }
 0x291   : > { %v1686_v20 = vpack.c.bf16 %v1411_v41, %v1409_v0 }
 0x292   : > { %v1452_v31 = vrot.slane %v1427_v34, 4 }
 0x293   : > { %1694 = vst [vmem:[%s1993_s15 + $0x58] sm:$0xff] %v1686_v20  }
 0x294   : > { %1628 = vst [vmem:[%s1993_s15 + $0x3c] sm:$0xf] %v1452_v31 }
 0x295   : > { %1813 = shalt.err (!%p1810_p7)
}
 0x296   : > { %s1865_s12 = smov 4  }
 0x297   : > { %1699 = dma.vmem_to_hbm [thread:$0]  (%p1946_p11), %s1493_s25, 1536, %s1495_s22, %s1480_s13, %s1864_s10, %s1864_s10, %s1865_s12  }
 0x298 PF: > { %s1509_s15 = sand.u32 1, %s1840_s18   ;;  %p2504_p5 = scmp.ge.s32.totalorder %s1852_s21, 2 }
 0x299   : > { %s1510_s26 = scalar_lea.sflag [#allocation5], %s1509_s15 }
 0x29a   : > { %p1706_p8 = pnand %p2504_p5, %p1950_p12 }
 0x29c   : > { %p1707_p10 = pneg %p1706_p8 }
 0x29e   : > { %1835 = dma.done.wait (%p1707_p10), %s1510_s26, 1536  }
 0x29f   : > { %1837 = vsyncadd (%p1707_p10), %s1510_s26, 4294965760  ;;  %p18_p2 = scmp.ge.s32.totalorder %s1921_s24, 4   ;;  %s2505_s18 = smov %s1844_s19 }
 0x2a0   : > { %s2506_s19 = smov %s1848_s20  ;;  %s2507_s20 = smov %s1933_s27 }
 0x2a1   : > { %s2508_s21 = smov %s1921_s24  ;;  %20 = sbr.rel (!%p18_p2) target bundleno = 5 (0x5), region = 93 }
 0x2a6   :  { %1516 = vsyncpa [#allocation4], 1 }
 0x2a7   :  { %1518 = vsyncpa [#allocation4 + $0x1], 1 }
 0x2a8   :  { %1519 = vsyncpa [#allocation5], 1 }
 0x2a9   :  { %1521 = vsyncpa [#allocation5 + $0x1], 1 }

</bundles_post_ra>
